<compile_context>
chip_gen: v7x
topology: tpu7x:2x2x1
jax: 0.10.0
libtpu: 0.0.40
codegen_flags: <defaults>
</compile_context>

<pallas_src>
import jax
import jax.numpy as jnp
from jax.experimental import pallas as pl
from jax.experimental.pallas import tpu as pltpu


def _round_up(n, m):
    return ((n + m - 1) // m) * m


def _reconstructor_kernel(
    x_ref,
    cw1_ref, cb1_ref, cw2_ref, cb2_ref, cw3_ref, cb3_ref,
    gw1_ref, gb1_ref, gw2_ref, gb2_ref, gw3_ref, gb3_ref,
    enc_ref, app_ref,
):
    """Fused 6-layer MLP (classifier + generator); all tiles resident in VMEM."""

    def dense_sigmoid(h, w_ref, b_ref, *, mxu_bf16):
        w = w_ref[...]
        if mxu_bf16:
            # bf16 operands, f32 accumulation: 2-4x MXU throughput for the
            # two 784-wide layers; bias/sigmoid stay f32 (v5e-safe).
            h = h.astype(jnp.bfloat16)
            w = w.astype(jnp.bfloat16)
        z = jnp.dot(h, w, preferred_element_type=jnp.float32)
        z = z + b_ref[...]  # (1, out) broadcasts over batch rows
        return jax.nn.sigmoid(z)

    h = x_ref[...].astype(jnp.float32)

    # Classifier: 784 -> 256 -> 16 -> 10
    h = dense_sigmoid(h, cw1_ref, cb1_ref, mxu_bf16=True)    # 784x256 (big)
    h = dense_sigmoid(h, cw2_ref, cb2_ref, mxu_bf16=False)   # 256x16  (tiny)
    enc = dense_sigmoid(h, cw3_ref, cb3_ref, mxu_bf16=False)  # 16x10   (tiny)
    enc_ref[...] = enc.astype(enc_ref.dtype)

    # Generator: 10 -> 16 -> 256 -> 784
    h = dense_sigmoid(enc, gw1_ref, gb1_ref, mxu_bf16=False)  # 10x16   (tiny)
    h = dense_sigmoid(h, gw2_ref, gb2_ref, mxu_bf16=False)    # 16x256  (tiny)
    app = dense_sigmoid(h, gw3_ref, gb3_ref, mxu_bf16=True)   # 256x784 (big)
    app_ref[...] = app.astype(app_ref.dtype)


def reconstructor_forward(x, params, *, batch_tile=256):
    """Run the Reconstructor forward pass with a Pallas kernel.

    Args:
      x: (B, 784) float32 input images (flattened).
      params: dict of pre-transposed weights/biases (see init_params).
      batch_tile: target rows per grid step (clamped / padded as needed).

    Returns:
      (encoding, appearance): ((B, 10), (B, 784)) float32 tensors.
    """
    B, D_in = x.shape
    assert D_in == 784

    # Clamp the tile for small batches, keep it a multiple of 8 (sublanes),
    # and zero-pad the batch so the grid divides evenly.
    tile = min(batch_tile, _round_up(B, 8))
    tile = _round_up(tile, 8)
    B_pad = _round_up(B, tile)
    if B_pad != B:
        x = jnp.pad(x, ((0, B_pad - B), (0, 0)))

    (cw1, cb1, cw2, cb2, cw3, cb3,
     gw1, gb1, gw2, gb2, gw3, gb3) = (
        params["cw1"], params["cb1"], params["cw2"], params["cb2"],
        params["cw3"], params["cb3"], params["gw1"], params["gb1"],
        params["gw2"], params["gb2"], params["gw3"], params["gb3"],
    )

    def full_spec(shape):
        # Whole-array block, same block for every grid step (grid-invariant).
        return pl.BlockSpec(shape, lambda i: tuple(0 for _ in shape))

    grid = (B_pad // tile,)

    in_specs = [
        pl.BlockSpec((tile, 784), lambda i: (i, 0)),  # x: tiled over batch
        full_spec(cw1.shape), full_spec(cb1.shape),
        full_spec(cw2.shape), full_spec(cb2.shape),
        full_spec(cw3.shape), full_spec(cb3.shape),
        full_spec(gw1.shape), full_spec(gb1.shape),
        full_spec(gw2.shape), full_spec(gb2.shape),
        full_spec(gw3.shape), full_spec(gb3.shape),
    ]
    out_specs = (
        pl.BlockSpec((tile, 10), lambda i: (i, 0)),
        pl.BlockSpec((tile, 784), lambda i: (i, 0)),
    )
    out_shape = (
        jax.ShapeDtypeStruct((B_pad, 10), jnp.float32),
        jax.ShapeDtypeStruct((B_pad, 784), jnp.float32),
    )

    # Advisory cost estimate for XLA's scheduler.
    per_row_flops = 2 * (784 * 256 + 256 * 16 + 16 * 10
                         + 10 * 16 + 16 * 256 + 256 * 784)
    per_row_trans = 256 + 16 + 10 + 16 + 256 + 784
    weight_bytes = 4 * (784 * 256 + 256 * 16 + 16 * 10
                        + 10 * 16 + 16 * 256 + 256 * 784
                        + 256 + 16 + 10 + 16 + 256 + 784)
    cost = pl.CostEstimate(
        flops=B_pad * per_row_flops,
        transcendentals=B_pad * per_row_trans,
        bytes_accessed=B_pad * (784 + 10 + 784) * 4 + weight_bytes,
    )

    fn = pl.pallas_call(
        _reconstructor_kernel,
        grid_spec=pltpu.PrefetchScalarGridSpec(
            num_scalar_prefetch=0,
            grid=grid,
            in_specs=in_specs,
            out_specs=out_specs,
        ),
        out_shape=out_shape,
        cost_estimate=cost,
        compiler_params=pltpu.CompilerParams(
            dimension_semantics=("parallel",),
        ),
    )
    enc, app = fn(x, cw1, cb1, cw2, cb2, cw3, cb3,
                  gw1, gb1, gw2, gb2, gw3, gb3)
    if B_pad != B:
        enc = enc[:B]
        app = app[:B]
    return enc, app


def init_params(key):
    """PyTorch-Linear-style init: U(-1/sqrt(fan_in), 1/sqrt(fan_in)).

    Weights stored as (in_dim, out_dim) (transposed vs torch.nn.Linear.weight),
    biases as (1, out_dim).
    """
    dims = [
        ("c", 784, 256), ("c", 256, 16), ("c", 16, 10),   # Classifier
        ("g", 10, 16), ("g", 16, 256), ("g", 256, 784),   # Generator
    ]
    params = {}
    idx = {"c": 0, "g": 0}
    for (tag, d_in, d_out) in dims:
        idx[tag] += 1
        key, kw, kb = jax.random.split(key, 3)
        bound = 1.0 / jnp.sqrt(jnp.float32(d_in))
        w = jax.random.uniform(kw, (d_in, d_out), jnp.float32, -bound, bound)
        b = jax.random.uniform(kb, (1, d_out), jnp.float32, -bound, bound)
        params[f"{tag}w{idx[tag]}"] = w
        params[f"{tag}b{idx[tag]}"] = b
    return params


def reconstructor_reference(x, params):
    """Pure-JAX f32 reference for correctness checking."""
    def dense_sig(h, w, b):
        return jax.nn.sigmoid(h @ w + b)
    h = dense_sig(x, params["cw1"], params["cb1"])
    h = dense_sig(h, params["cw2"], params["cb2"])
    enc = dense_sig(h, params["cw3"], params["cb3"])
    h = dense_sig(enc, params["gw1"], params["gb1"])
    h = dense_sig(h, params["gw2"], params["gb2"])
    app = dense_sig(h, params["gw3"], params["gb3"])
    return enc, app


if __name__ == "__main__":
    key = jax.random.PRNGKey(0)
    key, kx = jax.random.split(key)

    B = 16
    x = jax.random.uniform(kx, (B, 784), jnp.float32)  # MNIST-like flattened input
    params = init_params(key)

    enc, app = reconstructor_forward(x, params, batch_tile=256)
    jax.block_until_ready((enc, app))

    enc_ref, app_ref = reconstructor_reference(x, params)
    assert enc.shape == (B, 10) and app.shape == (B, 784)
    # bf16 MXU operands on the two 784-wide layers => relax tolerance vs f32 ref.
    assert jnp.allclose(enc, enc_ref, atol=1e-2)
    assert jnp.allclose(app, app_ref, atol=1e-2)

    print("KERNEL_OK")
</pallas_src>

<mosaic_0001>
module attributes {stable_mosaic.version = 11 : i64} {
  func.func @_reconstructor_kernel(%arg0: i32, %arg1: memref<16x784xf32, #tpu.memory_space<vmem>>, %arg2: memref<784x256xf32, #tpu.memory_space<vmem>>, %arg3: memref<1x256xf32, #tpu.memory_space<vmem>>, %arg4: memref<256x16xf32, #tpu.memory_space<vmem>>, %arg5: memref<1x16xf32, #tpu.memory_space<vmem>>, %arg6: memref<16x10xf32, #tpu.memory_space<vmem>>, %arg7: memref<1x10xf32, #tpu.memory_space<vmem>>, %arg8: memref<10x16xf32, #tpu.memory_space<vmem>>, %arg9: memref<1x16xf32, #tpu.memory_space<vmem>>, %arg10: memref<16x256xf32, #tpu.memory_space<vmem>>, %arg11: memref<1x256xf32, #tpu.memory_space<vmem>>, %arg12: memref<256x784xf32, #tpu.memory_space<vmem>>, %arg13: memref<1x784xf32, #tpu.memory_space<vmem>>, %arg14: memref<16x10xf32, #tpu.memory_space<vmem>>, %arg15: memref<16x784xf32, #tpu.memory_space<vmem>>) attributes {dimension_semantics = [#tpu.dimension_semantics<parallel>], iteration_bounds = array<i64: 1>, scalar_prefetch = 0 : i64, scratch_operands = 0 : i64, tpu.core_type = #tpu.core_type<tc>, window_params = [{transform_indices = @transform_0, window_bounds = array<i64: 16, 784>}, {pipeline_mode = #tpu.pipeline_mode<synchronous>, transform_indices = @transform_1, window_bounds = array<i64: 784, 256>}, {pipeline_mode = #tpu.pipeline_mode<synchronous>, transform_indices = @transform_2, window_bounds = array<i64: 1, 256>}, {pipeline_mode = #tpu.pipeline_mode<synchronous>, transform_indices = @transform_3, window_bounds = array<i64: 256, 16>}, {pipeline_mode = #tpu.pipeline_mode<synchronous>, transform_indices = @transform_4, window_bounds = array<i64: 1, 16>}, {pipeline_mode = #tpu.pipeline_mode<synchronous>, transform_indices = @transform_5, window_bounds = array<i64: 16, 10>}, {pipeline_mode = #tpu.pipeline_mode<synchronous>, transform_indices = @transform_6, window_bounds = array<i64: 1, 10>}, {pipeline_mode = #tpu.pipeline_mode<synchronous>, transform_indices = @transform_7, window_bounds = array<i64: 10, 16>}, {pipeline_mode = #tpu.pipeline_mode<synchronous>, transform_indices = @transform_8, window_bounds = array<i64: 1, 16>}, {pipeline_mode = #tpu.pipeline_mode<synchronous>, transform_indices = @transform_9, window_bounds = array<i64: 16, 256>}, {pipeline_mode = #tpu.pipeline_mode<synchronous>, transform_indices = @transform_10, window_bounds = array<i64: 1, 256>}, {pipeline_mode = #tpu.pipeline_mode<synchronous>, transform_indices = @transform_11, window_bounds = array<i64: 256, 784>}, {pipeline_mode = #tpu.pipeline_mode<synchronous>, transform_indices = @transform_12, window_bounds = array<i64: 1, 784>}, {transform_indices = @transform_13, window_bounds = array<i64: 16, 10>}, {transform_indices = @transform_14, window_bounds = array<i64: 16, 784>}]} {
    %c0 = arith.constant 0 : index
    %c0_0 = arith.constant 0 : index
    %0 = vector.load %arg1[%c0, %c0_0] : memref<16x784xf32, #tpu.memory_space<vmem>>, vector<16x784xf32>
    %c0_1 = arith.constant 0 : index
    %c0_2 = arith.constant 0 : index
    %1 = vector.load %arg2[%c0_1, %c0_2] : memref<784x256xf32, #tpu.memory_space<vmem>>, vector<784x256xf32>
    %2 = arith.truncf %0 : vector<16x784xf32> to vector<16x784xbf16>
    %3 = arith.truncf %1 : vector<784x256xf32> to vector<784x256xbf16>
    %cst = arith.constant dense<0.000000e+00> : vector<16x256xf32>
    %4 = tpu.matmul %2, %3, %cst {dimension_numbers = #tpu.dot_dimension_numbers<[1], [0], [0], [1], [0, 0, 1, 1], [], []>} : vector<16x784xbf16>, vector<784x256xbf16>, vector<16x256xf32> -> vector<16x256xf32>
    %c0_3 = arith.constant 0 : index
    %c0_4 = arith.constant 0 : index
    %5 = vector.load %arg3[%c0_3, %c0_4] : memref<1x256xf32, #tpu.memory_space<vmem>>, vector<1x256xf32>
    %6 = vector.broadcast %5 : vector<1x256xf32> to vector<16x256xf32>
    %7 = arith.addf %4, %6 : vector<16x256xf32>
    %8 = arith.negf %7 : vector<16x256xf32>
    %9 = math.exp %8 : vector<16x256xf32>
    %cst_5 = arith.constant 1.000000e+00 : f32
    %10 = vector.broadcast %cst_5 : f32 to vector<16x256xf32>
    %11 = arith.addf %10, %9 : vector<16x256xf32>
    %12 = arith.divf %10, %11 : vector<16x256xf32>
    %c0_6 = arith.constant 0 : index
    %c0_7 = arith.constant 0 : index
    %13 = vector.load %arg4[%c0_6, %c0_7] : memref<256x16xf32, #tpu.memory_space<vmem>>, vector<256x16xf32>
    %cst_8 = arith.constant dense<0.000000e+00> : vector<16x16xf32>
    %14 = tpu.matmul %12, %13, %cst_8 {dimension_numbers = #tpu.dot_dimension_numbers<[1], [0], [0], [1], [0, 0, 1, 1], [], []>} : vector<16x256xf32>, vector<256x16xf32>, vector<16x16xf32> -> vector<16x16xf32>
    %c0_9 = arith.constant 0 : index
    %c0_10 = arith.constant 0 : index
    %15 = vector.load %arg5[%c0_9, %c0_10] : memref<1x16xf32, #tpu.memory_space<vmem>>, vector<1x16xf32>
    %16 = vector.broadcast %15 : vector<1x16xf32> to vector<16x16xf32>
    %17 = arith.addf %14, %16 : vector<16x16xf32>
    %18 = arith.negf %17 : vector<16x16xf32>
    %19 = math.exp %18 : vector<16x16xf32>
    %cst_11 = arith.constant 1.000000e+00 : f32
    %20 = vector.broadcast %cst_11 : f32 to vector<16x16xf32>
    %21 = arith.addf %20, %19 : vector<16x16xf32>
    %22 = arith.divf %20, %21 : vector<16x16xf32>
    %c0_12 = arith.constant 0 : index
    %c0_13 = arith.constant 0 : index
    %23 = vector.load %arg6[%c0_12, %c0_13] : memref<16x10xf32, #tpu.memory_space<vmem>>, vector<16x10xf32>
    %cst_14 = arith.constant dense<0.000000e+00> : vector<16x10xf32>
    %24 = tpu.matmul %22, %23, %cst_14 {dimension_numbers = #tpu.dot_dimension_numbers<[1], [0], [0], [1], [0, 0, 1, 1], [], []>} : vector<16x16xf32>, vector<16x10xf32>, vector<16x10xf32> -> vector<16x10xf32>
    %c0_15 = arith.constant 0 : index
    %c0_16 = arith.constant 0 : index
    %25 = vector.load %arg7[%c0_15, %c0_16] : memref<1x10xf32, #tpu.memory_space<vmem>>, vector<1x10xf32>
    %26 = vector.broadcast %25 : vector<1x10xf32> to vector<16x10xf32>
    %27 = arith.addf %24, %26 : vector<16x10xf32>
    %28 = arith.negf %27 : vector<16x10xf32>
    %29 = math.exp %28 : vector<16x10xf32>
    %cst_17 = arith.constant 1.000000e+00 : f32
    %30 = vector.broadcast %cst_17 : f32 to vector<16x10xf32>
    %31 = arith.addf %30, %29 : vector<16x10xf32>
    %32 = arith.divf %30, %31 : vector<16x10xf32>
    %c0_18 = arith.constant 0 : index
    %c0_19 = arith.constant 0 : index
    %33 = vector.load %arg14[%c0_18, %c0_19] : memref<16x10xf32, #tpu.memory_space<vmem>>, vector<16x10xf32>
    tpu.vector_store %arg14[%c0_18, %c0_19], %32 {strides = array<i32>} : memref<16x10xf32, #tpu.memory_space<vmem>>, vector<16x10xf32>,
    %c0_20 = arith.constant 0 : index
    %c0_21 = arith.constant 0 : index
    %34 = vector.load %arg8[%c0_20, %c0_21] : memref<10x16xf32, #tpu.memory_space<vmem>>, vector<10x16xf32>
    %cst_22 = arith.constant dense<0.000000e+00> : vector<16x16xf32>
    %35 = tpu.matmul %32, %34, %cst_22 {dimension_numbers = #tpu.dot_dimension_numbers<[1], [0], [0], [1], [0, 0, 1, 1], [], []>} : vector<16x10xf32>, vector<10x16xf32>, vector<16x16xf32> -> vector<16x16xf32>
    %c0_23 = arith.constant 0 : index
    %c0_24 = arith.constant 0 : index
    %36 = vector.load %arg9[%c0_23, %c0_24] : memref<1x16xf32, #tpu.memory_space<vmem>>, vector<1x16xf32>
    %37 = vector.broadcast %36 : vector<1x16xf32> to vector<16x16xf32>
    %38 = arith.addf %35, %37 : vector<16x16xf32>
    %39 = arith.negf %38 : vector<16x16xf32>
    %40 = math.exp %39 : vector<16x16xf32>
    %cst_25 = arith.constant 1.000000e+00 : f32
    %41 = vector.broadcast %cst_25 : f32 to vector<16x16xf32>
    %42 = arith.addf %41, %40 : vector<16x16xf32>
    %43 = arith.divf %41, %42 : vector<16x16xf32>
    %c0_26 = arith.constant 0 : index
    %c0_27 = arith.constant 0 : index
    %44 = vector.load %arg10[%c0_26, %c0_27] : memref<16x256xf32, #tpu.memory_space<vmem>>, vector<16x256xf32>
    %cst_28 = arith.constant dense<0.000000e+00> : vector<16x256xf32>
    %45 = tpu.matmul %43, %44, %cst_28 {dimension_numbers = #tpu.dot_dimension_numbers<[1], [0], [0], [1], [0, 0, 1, 1], [], []>} : vector<16x16xf32>, vector<16x256xf32>, vector<16x256xf32> -> vector<16x256xf32>
    %c0_29 = arith.constant 0 : index
    %c0_30 = arith.constant 0 : index
    %46 = vector.load %arg11[%c0_29, %c0_30] : memref<1x256xf32, #tpu.memory_space<vmem>>, vector<1x256xf32>
    %47 = vector.broadcast %46 : vector<1x256xf32> to vector<16x256xf32>
    %48 = arith.addf %45, %47 : vector<16x256xf32>
    %49 = arith.negf %48 : vector<16x256xf32>
    %50 = math.exp %49 : vector<16x256xf32>
    %cst_31 = arith.constant 1.000000e+00 : f32
    %51 = vector.broadcast %cst_31 : f32 to vector<16x256xf32>
    %52 = arith.addf %51, %50 : vector<16x256xf32>
    %53 = arith.divf %51, %52 : vector<16x256xf32>
    %c0_32 = arith.constant 0 : index
    %c0_33 = arith.constant 0 : index
    %54 = vector.load %arg12[%c0_32, %c0_33] : memref<256x784xf32, #tpu.memory_space<vmem>>, vector<256x784xf32>
    %55 = arith.truncf %53 : vector<16x256xf32> to vector<16x256xbf16>
    %56 = arith.truncf %54 : vector<256x784xf32> to vector<256x784xbf16>
    %cst_34 = arith.constant dense<0.000000e+00> : vector<16x784xf32>
    %57 = tpu.matmul %55, %56, %cst_34 {dimension_numbers = #tpu.dot_dimension_numbers<[1], [0], [0], [1], [0, 0, 1, 1], [], []>} : vector<16x256xbf16>, vector<256x784xbf16>, vector<16x784xf32> -> vector<16x784xf32>
    %c0_35 = arith.constant 0 : index
    %c0_36 = arith.constant 0 : index
    %58 = vector.load %arg13[%c0_35, %c0_36] : memref<1x784xf32, #tpu.memory_space<vmem>>, vector<1x784xf32>
    %59 = vector.broadcast %58 : vector<1x784xf32> to vector<16x784xf32>
    %60 = arith.addf %57, %59 : vector<16x784xf32>
    %61 = arith.negf %60 : vector<16x784xf32>
    %62 = math.exp %61 : vector<16x784xf32>
    %cst_37 = arith.constant 1.000000e+00 : f32
    %63 = vector.broadcast %cst_37 : f32 to vector<16x784xf32>
    %64 = arith.addf %63, %62 : vector<16x784xf32>
    %65 = arith.divf %63, %64 : vector<16x784xf32>
    %c0_38 = arith.constant 0 : index
    %c0_39 = arith.constant 0 : index
    %66 = vector.load %arg15[%c0_38, %c0_39] : memref<16x784xf32, #tpu.memory_space<vmem>>, vector<16x784xf32>
    tpu.vector_store %arg15[%c0_38, %c0_39], %65 {strides = array<i32>} : memref<16x784xf32, #tpu.memory_space<vmem>>, vector<16x784xf32>,
    return
  }
  func.func @transform_0(%arg0: i32) -> (i32, i32) {
    %c0_i32 = arith.constant 0 : i32
    %c0_i32_0 = arith.constant 0 : i32
    return %arg0, %c0_i32 : i32, i32
  }
  func.func @transform_1(%arg0: i32) -> (i32, i32) {
    %c0_i32 = arith.constant 0 : i32
    %c0_i32_0 = arith.constant 0 : i32
    %c0_i32_1 = arith.constant 0 : i32
    return %c0_i32, %c0_i32_0 : i32, i32
  }
  func.func @transform_2(%arg0: i32) -> (i32, i32) {
    %c0_i32 = arith.constant 0 : i32
    %c0_i32_0 = arith.constant 0 : i32
    %c0_i32_1 = arith.constant 0 : i32
    return %c0_i32, %c0_i32_0 : i32, i32
  }
  func.func @transform_3(%arg0: i32) -> (i32, i32) {
    %c0_i32 = arith.constant 0 : i32
    %c0_i32_0 = arith.constant 0 : i32
    %c0_i32_1 = arith.constant 0 : i32
    return %c0_i32, %c0_i32_0 : i32, i32
  }
  func.func @transform_4(%arg0: i32) -> (i32, i32) {
    %c0_i32 = arith.constant 0 : i32
    %c0_i32_0 = arith.constant 0 : i32
    %c0_i32_1 = arith.constant 0 : i32
    return %c0_i32, %c0_i32_0 : i32, i32
  }
  func.func @transform_5(%arg0: i32) -> (i32, i32) {
    %c0_i32 = arith.constant 0 : i32
    %c0_i32_0 = arith.constant 0 : i32
    %c0_i32_1 = arith.constant 0 : i32
    return %c0_i32, %c0_i32_0 : i32, i32
  }
  func.func @transform_6(%arg0: i32) -> (i32, i32) {
    %c0_i32 = arith.constant 0 : i32
    %c0_i32_0 = arith.constant 0 : i32
    %c0_i32_1 = arith.constant 0 : i32
    return %c0_i32, %c0_i32_0 : i32, i32
  }
  func.func @transform_7(%arg0: i32) -> (i32, i32) {
    %c0_i32 = arith.constant 0 : i32
    %c0_i32_0 = arith.constant 0 : i32
    %c0_i32_1 = arith.constant 0 : i32
    return %c0_i32, %c0_i32_0 : i32, i32
  }
  func.func @transform_8(%arg0: i32) -> (i32, i32) {
    %c0_i32 = arith.constant 0 : i32
    %c0_i32_0 = arith.constant 0 : i32
    %c0_i32_1 = arith.constant 0 : i32
    return %c0_i32, %c0_i32_0 : i32, i32
  }
  func.func @transform_9(%arg0: i32) -> (i32, i32) {
    %c0_i32 = arith.constant 0 : i32
    %c0_i32_0 = arith.constant 0 : i32
    %c0_i32_1 = arith.constant 0 : i32
    return %c0_i32, %c0_i32_0 : i32, i32
  }
  func.func @transform_10(%arg0: i32) -> (i32, i32) {
    %c0_i32 = arith.constant 0 : i32
    %c0_i32_0 = arith.constant 0 : i32
    %c0_i32_1 = arith.constant 0 : i32
    return %c0_i32, %c0_i32_0 : i32, i32
  }
  func.func @transform_11(%arg0: i32) -> (i32, i32) {
    %c0_i32 = arith.constant 0 : i32
    %c0_i32_0 = arith.constant 0 : i32
    %c0_i32_1 = arith.constant 0 : i32
    return %c0_i32, %c0_i32_0 : i32, i32
  }
  func.func @transform_12(%arg0: i32) -> (i32, i32) {
    %c0_i32 = arith.constant 0 : i32
    %c0_i32_0 = arith.constant 0 : i32
    %c0_i32_1 = arith.constant 0 : i32
    return %c0_i32, %c0_i32_0 : i32, i32
  }
  func.func @transform_13(%arg0: i32) -> (i32, i32) {
    %c0_i32 = arith.constant 0 : i32
    %c0_i32_0 = arith.constant 0 : i32
    return %arg0, %c0_i32 : i32, i32
  }
  func.func @transform_14(%arg0: i32) -> (i32, i32) {
    %c0_i32 = arith.constant 0 : i32
    %c0_i32_0 = arith.constant 0 : i32
    return %arg0, %c0_i32 : i32, i32
  }
}

</mosaic_0001>

<bundles_post_ra>
// kernel: tpu_custom_call.1
= control target key start
LH: loop header
LB: loop body
LE: loop exit
PB: predicated region body
PF: predicated region fallthrough
CT: control target
= control target key end

     0   :  { %20 = vsyncpa [#allocation3], 0  ;;  %s3658_s0 = inlined_call_operand.vmem [shape: f32[16,784], index: 0, kind: input, shape index: {}]   ;;  %s3659_s1 = inlined_call_operand.vmem [shape: f32[784,256], index: 1, kind: input, shape index: {}]   ;;  %s3660_s2 = inlined_call_operand.vmem [shape: f32[1,256], index: 2, kind: input, shape index: {}]   ;;  %s3661_s3 = inlined_call_operand.vmem [shape: f32[256,16], index: 3, kind: input, shape index: {}]   ;;  %s3662_s4 = inlined_call_operand.vmem [shape: f32[1,16], index: 4, kind: input, shape index: {}]   ;;  %s3663_s5 = inlined_call_operand.vmem [shape: f32[16,10], index: 5, kind: input, shape index: {}]   ;;  %s3664_s6 = inlined_call_operand.vmem [shape: f32[1,10], index: 6, kind: input, shape index: {}]   ;;  %s3665_s7 = inlined_call_operand.vmem [shape: f32[10,16], index: 7, kind: input, shape index: {}]   ;;  %s3666_s8 = inlined_call_operand.vmem [shape: f32[1,16], index: 8, kind: input, shape index: {}]   ;;  %s3667_s9 = inlined_call_operand.vmem [shape: f32[16,256], index: 9, kind: input, shape index: {}]   ;;  %s3668_s10 = inlined_call_operand.vmem [shape: f32[1,256], index: 10, kind: input, shape index: {}]   ;;  %s3669_s11 = inlined_call_operand.vmem [shape: f32[256,784], index: 11, kind: input, shape index: {}]   ;;  %s3670_s12 = inlined_call_operand.vmem [shape: f32[1,784], index: 12, kind: input, shape index: {}]   ;;  %s3671_s13 = inlined_call_operand.hbm [shape: f32[16,10], index: 13, kind: output, shape index: {0}]   ;;  %s3672_s14 = inlined_call_operand.hbm [shape: f32[16,784], index: 14, kind: output, shape index: {1}]  }
   0x1   :  { %v64_v0 = vld [vmem:[%s3659_s1 + $0x8] sm:$0xff]  ;;  %v66_v1 = vld [vmem:[%s3659_s1 + $0x18] sm:$0xff]  ;;  %v63_v2 = vld [vmem:[%s3659_s1] sm:$0xff] }
   0x2   :  { %v267_v3 = vpack.c.bf16 %v66_v1, %v64_v0  ;;  %v65_v4 = vld [vmem:[%s3659_s1 + $0x10] sm:$0xff]  ;;  %v68_v5 = vld [vmem:[%s3659_s1 + $0x28] sm:$0xff]  ;;  %v70_v6 = vld [vmem:[%s3659_s1 + $0x38] sm:$0xff] }
   0x3   :  { %v266_v7 = vpack.c.bf16 %v65_v4, %v63_v2  ;;  %v269_v8 = vpack.c.bf16 %v70_v6, %v68_v5  ;;  %v67_v9 = vld [vmem:[%s3659_s1 + $0x20] sm:$0xff]  ;;  %v69_v10 = vld [vmem:[%s3659_s1 + $0x30] sm:$0xff]  ;;  %v72_v11 = vld [vmem:[%s3659_s1 + $0x48] sm:$0xff] }
   0x4   :  { %380 = vmatprep.subr.bf16.mxu0 %v267_v3  ;;  %v74_v12 = vld [vmem:[%s3659_s1 + $0x58] sm:$0xff]  ;;  %v268_v13 = vpack.c.bf16 %v69_v10, %v67_v9  ;;  %v71_v15 = vld [vmem:[%s3659_s1 + $0x40] sm:$0xff]  ;;  %v73_v16 = vld [vmem:[%s3659_s1 + $0x50] sm:$0xff] }
   0x5   :  { %381 = vmatpush1.bf16.msra.mxu0 %v266_v7  ;;  %v271_v14 = vpack.c.bf16 %v74_v12, %v72_v11  ;;  %v76_v17 = vld [vmem:[%s3659_s1 + $0x68] sm:$0xff]  ;;  %v78_v18 = vld [vmem:[%s3659_s1 + $0x78] sm:$0xff]  ;;  %v270_v19 = vpack.c.bf16 %v73_v16, %v71_v15  ;;  %v75_v21 = vld [vmem:[%s3659_s1 + $0x60] sm:$0xff] }
   0x6   :  { %382 = vmatprep.subr.bf16.mxu0 %v269_v8  ;;  %v273_v20 = vpack.c.bf16 %v78_v18, %v76_v17  ;;  %v77_v22 = vld [vmem:[%s3659_s1 + $0x70] sm:$0xff]  ;;  %v80_v23 = vld [vmem:[%s3659_s1 + $0x88] sm:$0xff]  ;;  %v82_v24 = vld [vmem:[%s3659_s1 + $0x98] sm:$0xff] }
   0x7   :  { %v272_v25 = vpack.c.bf16 %v77_v22, %v75_v21  ;;  %v275_v26 = vpack.c.bf16 %v82_v24, %v80_v23  ;;  %v79_v27 = vld [vmem:[%s3659_s1 + $0x80] sm:$0xff]  ;;  %v81_v28 = vld [vmem:[%s3659_s1 + $0x90] sm:$0xff]  ;;  %v84_v29 = vld [vmem:[%s3659_s1 + $0xa8] sm:$0xff] }
   0x8   :  { %v86_v30 = vld [vmem:[%s3659_s1 + $0xb8] sm:$0xff]  ;;  %v274_v31 = vpack.c.bf16 %v81_v28, %v79_v27  ;;  %v83_v33 = vld [vmem:[%s3659_s1 + $0xa0] sm:$0xff]  ;;  %v85_v34 = vld [vmem:[%s3659_s1 + $0xb0] sm:$0xff] }
   0x9   :  { %383 = vmatpush1.bf16.msra.mxu0 %v268_v13  ;;  %v277_v32 = vpack.c.bf16 %v86_v30, %v84_v29  ;;  %v88_v35 = vld [vmem:[%s3659_s1 + $0xc8] sm:$0xff]  ;;  %v90_v36 = vld [vmem:[%s3659_s1 + $0xd8] sm:$0xff]  ;;  %v276_v37 = vpack.c.bf16 %v85_v34, %v83_v33  ;;  %v87_v38 = vld [vmem:[%s3659_s1 + $0xc0] sm:$0xff] }
   0xa   :  { %384 = vmatprep.subr.bf16.mxu0 %v271_v14  ;;  %v279_v39 = vpack.c.bf16 %v90_v36, %v88_v35  ;;  %v89_v40 = vld [vmem:[%s3659_s1 + $0xd0] sm:$0xff]  ;;  %v50_v41 = vld [vmem:[%s3658_s0 + $0x8] sm:$0xff]  ;;  %v57_v42 = vld [vmem:[%s3658_s0 + $0x40] sm:$0xff] }
   0xb   :  { %v92_v43 = vld [vmem:[%s3659_s1 + $0xe8] sm:$0xff]  ;;  %v94_v44 = vld [vmem:[%s3659_s1 + $0xf8] sm:$0xff]  ;;  %v260_v45 = vpack.c.bf16 %v57_v42, %v50_v41  ;;  %v278_v46 = vpack.c.bf16 %v89_v40, %v87_v38  ;;  %v91_v48 = vld [vmem:[%s3659_s1 + $0xe0] sm:$0xff] }
   0xc   :  { %v281_v47 = vpack.c.bf16 %v94_v44, %v92_v43  ;;  %v93_v49 = vld [vmem:[%s3659_s1 + $0xf0] sm:$0xff]  ;;  %v96_v50 = vld [vmem:[%s3659_s1 + $0x108] sm:$0xff]  ;;  %v98_v51 = vld [vmem:[%s3659_s1 + $0x118] sm:$0xff] }
   0xd   :  { %385 = vmatpush1.bf16.msra.mxu0 %v270_v19  ;;  %412 = vmatprep.mubr.bf16.mxu0 %v260_v45  ;;  %v280_v52 = vpack.c.bf16 %v93_v49, %v91_v48  ;;  %v283_v53 = vpack.c.bf16 %v98_v51, %v96_v50  ;;  %v95_v54 = vld [vmem:[%s3659_s1 + $0x100] sm:$0xff]  ;;  %v97_v55 = vld [vmem:[%s3659_s1 + $0x110] sm:$0xff]  ;;  %v100_v56 = vld [vmem:[%s3659_s1 + $0x128] sm:$0xff] }
   0xe   :  { %386 = vmatprep.subr.bf16.mxu0 %v273_v20  ;;  %v102_v57 = vld [vmem:[%s3659_s1 + $0x138] sm:$0xff]  ;;  %v282_v58 = vpack.c.bf16 %v97_v55, %v95_v54  ;;  %v99_v60 = vld [vmem:[%s3659_s1 + $0x120] sm:$0xff]  ;;  %v101_v61 = vld [vmem:[%s3659_s1 + $0x130] sm:$0xff] }
   0xf   :  { %v285_v59 = vpack.c.bf16 %v102_v57, %v100_v56  ;;  %v104_v62 = vld [vmem:[%s3659_s1 + $0x148] sm:$0xff]  ;;  %v106_v63 = vld [vmem:[%s3659_s1 + $0x158] sm:$0xff]  ;;  %v284_v0 = vpack.c.bf16 %v101_v61, %v99_v60  ;;  %v103_v2 = vld [vmem:[%s3659_s1 + $0x140] sm:$0xff] }
  0x10   :  { %v287_v1 = vpack.c.bf16 %v106_v63, %v104_v62  ;;  %v105_v3 = vld [vmem:[%s3659_s1 + $0x150] sm:$0xff]  ;;  %v108_v4 = vld [vmem:[%s3659_s1 + $0x168] sm:$0xff]  ;;  %v110_v5 = vld [vmem:[%s3659_s1 + $0x178] sm:$0xff] }
  0x11   :  { %387 = vmatpush1.bf16.msra.mxu0 %v272_v25  ;;  %v286_v6 = vpack.c.bf16 %v105_v3, %v103_v2  ;;  %v289_v7 = vpack.c.bf16 %v110_v5, %v108_v4  ;;  %v107_v8 = vld [vmem:[%s3659_s1 + $0x160] sm:$0xff]  ;;  %v109_v9 = vld [vmem:[%s3659_s1 + $0x170] sm:$0xff]  ;;  %v112_v10 = vld [vmem:[%s3659_s1 + $0x188] sm:$0xff] }
  0x12   :  { %388 = vmatprep.subr.bf16.mxu0 %v275_v26  ;;  %v114_v11 = vld [vmem:[%s3659_s1 + $0x198] sm:$0xff]  ;;  %v288_v12 = vpack.c.bf16 %v109_v9, %v107_v8  ;;  %v111_v14 = vld [vmem:[%s3659_s1 + $0x180] sm:$0xff]  ;;  %v113_v15 = vld [vmem:[%s3659_s1 + $0x190] sm:$0xff] }
  0x13   :  { %v291_v13 = vpack.c.bf16 %v114_v11, %v112_v10  ;;  %v116_v16 = vld [vmem:[%s3659_s1 + $0x1a8] sm:$0xff]  ;;  %v118_v17 = vld [vmem:[%s3659_s1 + $0x1b8] sm:$0xff]  ;;  %v290_v18 = vpack.c.bf16 %v113_v15, %v111_v14  ;;  %v115_v20 = vld [vmem:[%s3659_s1 + $0x1a0] sm:$0xff] }
  0x14   :  { %v293_v19 = vpack.c.bf16 %v118_v17, %v116_v16  ;;  %v117_v21 = vld [vmem:[%s3659_s1 + $0x1b0] sm:$0xff]  ;;  %v120_v22 = vld [vmem:[%s3659_s1 + $0x1c8] sm:$0xff]  ;;  %v122_v23 = vld [vmem:[%s3659_s1 + $0x1d8] sm:$0xff] }
  0x15   :  { %389 = vmatpush1.bf16.msra.mxu0 %v274_v31  ;;  %v292_v24 = vpack.c.bf16 %v117_v21, %v115_v20  ;;  %v295_v25 = vpack.c.bf16 %v122_v23, %v120_v22  ;;  %v119_v26 = vld [vmem:[%s3659_s1 + $0x1c0] sm:$0xff]  ;;  %v121_v27 = vld [vmem:[%s3659_s1 + $0x1d0] sm:$0xff]  ;;  %v124_v28 = vld [vmem:[%s3659_s1 + $0x1e8] sm:$0xff] }
  0x16   :  { %390 = vmatprep.subr.bf16.mxu0 %v277_v32  ;;  %v126_v29 = vld [vmem:[%s3659_s1 + $0x1f8] sm:$0xff]  ;;  %v294_v30 = vpack.c.bf16 %v121_v27, %v119_v26  ;;  %v123_v32 = vld [vmem:[%s3659_s1 + $0x1e0] sm:$0xff]  ;;  %v125_v33 = vld [vmem:[%s3659_s1 + $0x1f0] sm:$0xff] }
  0x17   :  { %v297_v31 = vpack.c.bf16 %v126_v29, %v124_v28  ;;  %v128_v34 = vld [vmem:[%s3659_s1 + $0x208] sm:$0xff]  ;;  %v130_v35 = vld [vmem:[%s3659_s1 + $0x218] sm:$0xff]  ;;  %v296_v36 = vpack.c.bf16 %v125_v33, %v123_v32  ;;  %v129_v41 = vld [vmem:[%s3659_s1 + $0x210] sm:$0xff] }
  0x18   :  { %v56_v38 = vld [vmem:[%s3658_s0 + $0x38] sm:$0xff]  ;;  %v299_v40 = vpack.c.bf16 %v130_v35, %v128_v34  ;;  %v59_v43 = vld [vmem:[%s3658_s0 + $0x50] sm:$0xff]  ;;  %v132_v44 = vld [vmem:[%s3659_s1 + $0x228] sm:$0xff] }
  0x19   :  { %391 = vmatpush1.bf16.msra.mxu0 %v276_v37  ;;  %v49_v37 = vld [vmem:[%s3658_s0] sm:$0xff]  ;;  %v52_v42 = vld [vmem:[%s3658_s0 + $0x18] sm:$0xff]  ;;  %v133_v51 = vld [vmem:[%s3659_s1 + $0x230] sm:$0xff] }
  0x1a   :  { %392 = vmatprep.subr.bf16.mxu0 %v279_v39  ;;  %v127_v39 = vld [vmem:[%s3659_s1 + $0x200] sm:$0xff]  ;;  %v134_v45 = vld [vmem:[%s3659_s1 + $0x238] sm:$0xff]  ;;  %v262_v48 = vpack.c.bf16 %v59_v43, %v52_v42  ;;  %v137_v57 = vld [vmem:[%s3659_s1 + $0x250] sm:$0xff] }
  0x1b   :  { %v301_v49 = vpack.c.bf16 %v134_v45, %v132_v44  ;;  %v131_v50 = vld [vmem:[%s3659_s1 + $0x220] sm:$0xff] }
  0x1c   :  { %v300_v54 = vpack.c.bf16 %v133_v51, %v131_v50  ;;  %v135_v56 = vld [vmem:[%s3659_s1 + $0x240] sm:$0xff] }
  0x1d   :  { %393 = vmatpush1.bf16.msra.mxu0 %v278_v46  ;;  %v259_v46 = vpack.c.bf16 %v56_v38, %v49_v37 }
  0x1e   :  { %394 = vmatprep.subr.bf16.mxu0 %v281_v47  ;;  %v298_v47 = vpack.c.bf16 %v129_v41, %v127_v39 }
  0x21   :  { %395 = vmatpush1.bf16.msra.mxu0 %v280_v52  ;;  %v136_v52 = vld [vmem:[%s3659_s1 + $0x248] sm:$0xff] }
  0x22   :  { %396 = vmatprep.subr.bf16.mxu0 %v283_v53  ;;  %v138_v53 = vld [vmem:[%s3659_s1 + $0x258] sm:$0xff] }
  0x23   :  { %v303_v55 = vpack.c.bf16 %v138_v53, %v136_v52 }
  0x25   :  { %397 = vmatpush1.bf16.msra.mxu0 %v282_v58  ;;  %v140_v58 = vld [vmem:[%s3659_s1 + $0x268] sm:$0xff] }
  0x26   :  { %398 = vmatprep.subr.bf16.mxu0 %v285_v59  ;;  %v142_v59 = vld [vmem:[%s3659_s1 + $0x278] sm:$0xff] }
  0x29   :  { %399 = vmatpush1.bf16.msra.mxu0 %v284_v0 }
  0x2a   :  { %400 = vmatprep.subr.bf16.mxu0 %v287_v1 }
  0x2d   :  { %401 = vmatpush1.bf16.msra.mxu0 %v286_v6 }
  0x2e   :  { %402 = vmatprep.subr.bf16.mxu0 %v289_v7 }
  0x31   :  { %403 = vmatpush1.bf16.msra.mxu0 %v288_v12 }
  0x32   :  { %404 = vmatprep.subr.bf16.mxu0 %v291_v13 }
  0x35   :  { %405 = vmatpush1.bf16.msra.mxu0 %v290_v18 }
  0x36   :  { %406 = vmatprep.subr.bf16.mxu0 %v293_v19 }
  0x39   :  { %407 = vmatpush1.bf16.msra.mxu0 %v292_v24 }
  0x3a   :  { %408 = vmatprep.subr.bf16.mxu0 %v295_v25 }
  0x3d   :  { %409 = vmatpush1.bf16.msra.mxu0 %v294_v30 }
  0x3e   :  { %410 = vmatprep.subr.bf16.mxu0 %v297_v31 }
  0x41   :  { %411 = vmatpush1.bf16.msra.mxu0 %v296_v36 }
  0x42   :  { %423 = vmatprep.subr.bf16.mxu0 %v299_v40 }
  0x44   :  { %413 = vmatmul.mubr.bf16.vlgmr.msra.gmra.mrb[0].mxu0 %v259_v46 }
  0x45   :  { %424 = vmatpush1.bf16.msra.mxu0 %v298_v47  ;;  %455 = vmatprep.mubr.bf16.mxu0 %v262_v48 }
  0x46   :  { %425 = vmatprep.subr.bf16.mxu0 %v301_v49 }
  0x47   :  { %21 = vsyncpa [#allocation5], 0  ;;  %v302_v60 = vpack.c.bf16 %v137_v57, %v135_v56  ;;  %v305_v61 = vpack.c.bf16 %v142_v59, %v140_v58  ;;  %v139_v62 = vld [vmem:[%s3659_s1 + $0x260] sm:$0xff]  ;;  %v141_v63 = vld [vmem:[%s3659_s1 + $0x270] sm:$0xff]  ;;  %vm376_vm0 = vcmask 130048   ;;  %vm822_vm1 = vcmask 1041408  }
  0x48   :  { %v144_v0 = vld [vmem:[%s3659_s1 + $0x288] sm:$0xff]  ;;  %v146_v1 = vld [vmem:[%s3659_s1 + $0x298] sm:$0xff]  ;;  %v304_v2 = vpack.c.bf16 %v141_v63, %v139_v62  ;;  %v143_v4 = vld [vmem:[%s3659_s1 + $0x280] sm:$0xff]  ;;  %vm2064_vm2 = vmmov 1   ;;  %vm804_vm4 = vcmask 80896  }
  0x49   :  { %426 = vmatpush1.bf16.msra.mxu0 %v300_v54  ;;  %v307_v3 = vpack.c.bf16 %v146_v1, %v144_v0  ;;  %v145_v5 = vld [vmem:[%s3659_s1 + $0x290] sm:$0xff]  ;;  %v148_v6 = vld [vmem:[%s3659_s1 + $0x2a8] sm:$0xff]  ;;  %v150_v7 = vld [vmem:[%s3659_s1 + $0x2b8] sm:$0xff] }
  0x4a   :  { %427 = vmatprep.subr.bf16.mxu0 %v303_v55  ;;  %v592_v8 = vld [vmem:[%s3661_s3 + $0x80] sm:$0xff]  ;;  %v593_v9 = vld [vmem:[%s3661_s3 + $0x88] sm:$0xff]  ;;  %v306_v10 = vpack.c.bf16 %v145_v5, %v143_v4  ;;  %v309_v12 = vpack.c.bf16 %v150_v7, %v148_v6  ;;  %v149_v14 = vld [vmem:[%s3659_s1 + $0x2b0] sm:$0xff] }
  0x4b   :  { %v1832_v11 = vpack.c.bf16 %v593_v9, %v592_v8  ;;  %v147_v13 = vld [vmem:[%s3659_s1 + $0x2a0] sm:$0xff]  ;;  %v152_v15 = vld [vmem:[%s3659_s1 + $0x2c8] sm:$0xff]  ;;  %v154_v16 = vld [vmem:[%s3659_s1 + $0x2d8] sm:$0xff] }
  0x4c   :  { %v308_v17 = vpack.c.bf16 %v149_v14, %v147_v13  ;;  %v311_v18 = vpack.c.bf16 %v154_v16, %v152_v15  ;;  %v151_v19 = vld [vmem:[%s3659_s1 + $0x2c0] sm:$0xff]  ;;  %v153_v20 = vld [vmem:[%s3659_s1 + $0x2d0] sm:$0xff]  ;;  %v156_v21 = vld [vmem:[%s3659_s1 + $0x2e8] sm:$0xff] }
  0x4d   :  { %428 = vmatpush1.bf16.msra.mxu0 %v302_v60  ;;  %1833 = vmatprep.subr.bf16.mxu1 %v1832_v11  ;;  %v158_v22 = vld [vmem:[%s3659_s1 + $0x2f8] sm:$0xff]  ;;  %v310_v23 = vpack.c.bf16 %v153_v20, %v151_v19  ;;  %v155_v25 = vld [vmem:[%s3659_s1 + $0x2e0] sm:$0xff]  ;;  %v157_v26 = vld [vmem:[%s3659_s1 + $0x2f0] sm:$0xff] }
  0x4e   :  { %429 = vmatprep.subr.bf16.mxu0 %v305_v61  ;;  %v313_v24 = vpack.c.bf16 %v158_v22, %v156_v21  ;;  %v160_v27 = vld [vmem:[%s3659_s1 + $0x308] sm:$0xff]  ;;  %v162_v28 = vld [vmem:[%s3659_s1 + $0x318] sm:$0xff]  ;;  %v312_v29 = vpack.c.bf16 %v157_v26, %v155_v25  ;;  %v159_v31 = vld [vmem:[%s3659_s1 + $0x300] sm:$0xff] }
  0x4f   :  { %v315_v30 = vpack.c.bf16 %v162_v28, %v160_v27  ;;  %v161_v32 = vld [vmem:[%s3659_s1 + $0x310] sm:$0xff]  ;;  %v164_v33 = vld [vmem:[%s3659_s1 + $0x328] sm:$0xff]  ;;  %v166_v34 = vld [vmem:[%s3659_s1 + $0x338] sm:$0xff] }
  0x50   :  { %v314_v35 = vpack.c.bf16 %v161_v32, %v159_v31  ;;  %v317_v36 = vpack.c.bf16 %v166_v34, %v164_v33  ;;  %v163_v37 = vld [vmem:[%s3659_s1 + $0x320] sm:$0xff]  ;;  %v165_v38 = vld [vmem:[%s3659_s1 + $0x330] sm:$0xff]  ;;  %v168_v39 = vld [vmem:[%s3659_s1 + $0x348] sm:$0xff] }
  0x51   :  { %430 = vmatpush1.bf16.msra.mxu0 %v304_v2  ;;  %v170_v40 = vld [vmem:[%s3659_s1 + $0x358] sm:$0xff]  ;;  %v316_v41 = vpack.c.bf16 %v165_v38, %v163_v37  ;;  %v167_v43 = vld [vmem:[%s3659_s1 + $0x340] sm:$0xff]  ;;  %v169_v44 = vld [vmem:[%s3659_s1 + $0x350] sm:$0xff] }
  0x52   :  { %431 = vmatprep.subr.bf16.mxu0 %v307_v3  ;;  %v319_v42 = vpack.c.bf16 %v170_v40, %v168_v39  ;;  %v172_v45 = vld [vmem:[%s3659_s1 + $0x368] sm:$0xff]  ;;  %v174_v46 = vld [vmem:[%s3659_s1 + $0x378] sm:$0xff]  ;;  %v318_v47 = vpack.c.bf16 %v169_v44, %v167_v43  ;;  %v171_v49 = vld [vmem:[%s3659_s1 + $0x360] sm:$0xff] }
  0x53   :  { %v321_v48 = vpack.c.bf16 %v174_v46, %v172_v45  ;;  %v173_v50 = vld [vmem:[%s3659_s1 + $0x370] sm:$0xff]  ;;  %v176_v51 = vld [vmem:[%s3659_s1 + $0x388] sm:$0xff]  ;;  %v178_v52 = vld [vmem:[%s3659_s1 + $0x398] sm:$0xff] }
  0x54   :  { %v320_v53 = vpack.c.bf16 %v173_v50, %v171_v49  ;;  %v323_v54 = vpack.c.bf16 %v178_v52, %v176_v51  ;;  %v175_v55 = vld [vmem:[%s3659_s1 + $0x380] sm:$0xff]  ;;  %v177_v56 = vld [vmem:[%s3659_s1 + $0x390] sm:$0xff]  ;;  %v180_v57 = vld [vmem:[%s3659_s1 + $0x3a8] sm:$0xff] }
  0x55   :  { %432 = vmatpush1.bf16.msra.mxu0 %v306_v10  ;;  %v182_v58 = vld [vmem:[%s3659_s1 + $0x3b8] sm:$0xff]  ;;  %v322_v59 = vpack.c.bf16 %v177_v56, %v175_v55  ;;  %v179_v61 = vld [vmem:[%s3659_s1 + $0x3a0] sm:$0xff]  ;;  %v181_v62 = vld [vmem:[%s3659_s1 + $0x3b0] sm:$0xff] }
  0x56   :  { %433 = vmatprep.subr.bf16.mxu0 %v309_v12  ;;  %v325_v60 = vpack.c.bf16 %v182_v58, %v180_v57  ;;  %v184_v63 = vld [vmem:[%s3659_s1 + $0x3c8] sm:$0xff]  ;;  %v186_v0 = vld [vmem:[%s3659_s1 + $0x3d8] sm:$0xff]  ;;  %v324_v1 = vpack.c.bf16 %v181_v62, %v179_v61  ;;  %v183_v3 = vld [vmem:[%s3659_s1 + $0x3c0] sm:$0xff] }
  0x57   :  { %v327_v2 = vpack.c.bf16 %v186_v0, %v184_v63  ;;  %v185_v4 = vld [vmem:[%s3659_s1 + $0x3d0] sm:$0xff]  ;;  %v188_v5 = vld [vmem:[%s3659_s1 + $0x3e8] sm:$0xff]  ;;  %v190_v6 = vld [vmem:[%s3659_s1 + $0x3f8] sm:$0xff] }
  0x58   :  { %v326_v7 = vpack.c.bf16 %v185_v4, %v183_v3  ;;  %v329_v8 = vpack.c.bf16 %v190_v6, %v188_v5  ;;  %v187_v9 = vld [vmem:[%s3659_s1 + $0x3e0] sm:$0xff]  ;;  %v189_v10 = vld [vmem:[%s3659_s1 + $0x3f0] sm:$0xff]  ;;  %v192_v11 = vld [vmem:[%s3659_s1 + $0x408] sm:$0xff] }
  0x59   :  { %434 = vmatpush1.bf16.msra.mxu0 %v308_v17  ;;  %v194_v12 = vld [vmem:[%s3659_s1 + $0x418] sm:$0xff]  ;;  %v328_v13 = vpack.c.bf16 %v189_v10, %v187_v9  ;;  %v51_v14 = vld [vmem:[%s3658_s0 + $0x10] sm:$0xff]  ;;  %v58_v15 = vld [vmem:[%s3658_s0 + $0x48] sm:$0xff] }
  0x5a   :  { %435 = vmatprep.subr.bf16.mxu0 %v311_v18  ;;  %v191_v16 = vld [vmem:[%s3659_s1 + $0x400] sm:$0xff]  ;;  %v331_v17 = vpack.c.bf16 %v194_v12, %v192_v11  ;;  %v193_v18 = vld [vmem:[%s3659_s1 + $0x410] sm:$0xff]  ;;  %v54_v19 = vld [vmem:[%s3658_s0 + $0x28] sm:$0xff] }
  0x5b   :  { %v61_v20 = vld [vmem:[%s3658_s0 + $0x60] sm:$0xff]  ;;  %v196_v21 = vld [vmem:[%s3659_s1 + $0x428] sm:$0xff]  ;;  %v198_v22 = vld [vmem:[%s3659_s1 + $0x438] sm:$0xff] }
  0x5c   :  { %v264_v25 = vpack.c.bf16 %v61_v20, %v54_v19  ;;  %v333_v26 = vpack.c.bf16 %v198_v22, %v196_v21  ;;  %v195_v27 = vld [vmem:[%s3659_s1 + $0x420] sm:$0xff]  ;;  %v197_v28 = vld [vmem:[%s3659_s1 + $0x430] sm:$0xff]  ;;  %v236_v19 = vld [vmem:[%s3659_s1 + $0x568] sm:$0xff] }
  0x5d   :  { %436 = vmatpush1.bf16.msra.mxu0 %v310_v23  ;;  %v261_v23 = vpack.c.bf16 %v58_v15, %v51_v14  ;;  %v332_v31 = vpack.c.bf16 %v197_v28, %v195_v27  ;;  %v199_v33 = vld [vmem:[%s3659_s1 + $0x440] sm:$0xff]  ;;  %v201_v34 = vld [vmem:[%s3659_s1 + $0x450] sm:$0xff]  ;;  %v234_v14 = vld [vmem:[%s3659_s1 + $0x558] sm:$0xff] }
  0x5e   :  { %437 = vmatprep.subr.bf16.mxu0 %v313_v24  ;;  %v330_v24 = vpack.c.bf16 %v193_v18, %v191_v16  ;;  %v334_v37 = vpack.c.bf16 %v201_v34, %v199_v33  ;;  %v203_v39 = vld [vmem:[%s3659_s1 + $0x460] sm:$0xff]  ;;  %v205_v40 = vld [vmem:[%s3659_s1 + $0x470] sm:$0xff]  ;;  %v238_v20 = vld [vmem:[%s3659_s1 + $0x578] sm:$0xff] }
  0x5f   :  { %v336_v43 = vpack.c.bf16 %v205_v40, %v203_v39  ;;  %v207_v45 = vld [vmem:[%s3659_s1 + $0x480] sm:$0xff]  ;;  %v209_v46 = vld [vmem:[%s3659_s1 + $0x490] sm:$0xff]  ;;  %v353_v22 = vpack.c.bf16 %v238_v20, %v236_v19  ;;  %vm1869_vm3 = vmpackc.low %vm822_vm1, %vm2064_vm2 }
  0x60   :  { %v338_v49 = vpack.c.bf16 %v209_v46, %v207_v45  ;;  %v211_v51 = vld [vmem:[%s3659_s1 + $0x4a0] sm:$0xff]  ;;  %v213_v52 = vld [vmem:[%s3659_s1 + $0x4b0] sm:$0xff] }
  0x61   :  { %438 = vmatpush1.bf16.msra.mxu0 %v312_v29  ;;  %v200_v29 = vld [vmem:[%s3659_s1 + $0x448] sm:$0xff]  ;;  %v340_v55 = vpack.c.bf16 %v213_v52, %v211_v51  ;;  %v215_v57 = vld [vmem:[%s3659_s1 + $0x4c0] sm:$0xff]  ;;  %v217_v58 = vld [vmem:[%s3659_s1 + $0x4d0] sm:$0xff] }
  0x62   :  { %439 = vmatprep.subr.bf16.mxu0 %v315_v30  ;;  %v202_v30 = vld [vmem:[%s3659_s1 + $0x458] sm:$0xff]  ;;  %v342_v61 = vpack.c.bf16 %v217_v58, %v215_v57  ;;  %v219_v63 = vld [vmem:[%s3659_s1 + $0x4e0] sm:$0xff]  ;;  %v221_v0 = vld [vmem:[%s3659_s1 + $0x4f0] sm:$0xff] }
  0x63   :  { %v335_v32 = vpack.c.bf16 %v202_v30, %v200_v29  ;;  %v344_v3 = vpack.c.bf16 %v221_v0, %v219_v63  ;;  %v223_v5 = vld [vmem:[%s3659_s1 + $0x500] sm:$0xff]  ;;  %v225_v6 = vld [vmem:[%s3659_s1 + $0x510] sm:$0xff]  ;;  %v577_v0 = vld [vmem:[%s3661_s3 + $0x8] sm:$0xff] }
  0x64   :  { %v346_v9 = vpack.c.bf16 %v225_v6, %v223_v5  ;;  %v227_v11 = vld [vmem:[%s3659_s1 + $0x520] sm:$0xff]  ;;  %v229_v12 = vld [vmem:[%s3659_s1 + $0x530] sm:$0xff]  ;;  %v579_v6 = vld [vmem:[%s3661_s3 + $0x18] sm:$0xff] }
  0x65   :  { %440 = vmatpush1.bf16.msra.mxu0 %v314_v35  ;;  %v204_v35 = vld [vmem:[%s3659_s1 + $0x468] sm:$0xff]  ;;  %v348_v15 = vpack.c.bf16 %v229_v12, %v227_v11  ;;  %v233_v18 = vld [vmem:[%s3659_s1 + $0x550] sm:$0xff]  ;;  %v239_v29 = vld [vmem:[%s3659_s1 + $0x580] sm:$0xff] }
  0x66   :  { %441 = vmatprep.subr.bf16.mxu0 %v317_v36  ;;  %v206_v36 = vld [vmem:[%s3659_s1 + $0x478] sm:$0xff]  ;;  %v241_v30 = vld [vmem:[%s3659_s1 + $0x590] sm:$0xff]  ;;  %v53_v52 = vld [vmem:[%s3658_s0 + $0x20] sm:$0xff] }
  0x67   :  { %v337_v38 = vpack.c.bf16 %v206_v36, %v204_v35  ;;  %v354_v33 = vpack.c.bf16 %v241_v30, %v239_v29  ;;  %v243_v35 = vld [vmem:[%s3659_s1 + $0x5a0] sm:$0xff]  ;;  %v245_v36 = vld [vmem:[%s3659_s1 + $0x5b0] sm:$0xff]  ;;  %v581_v12 = vld [vmem:[%s3661_s3 + $0x28] sm:$0xff] }
  0x68   :  { %v356_v39 = vpack.c.bf16 %v245_v36, %v243_v35  ;;  %v576_v63 = vld [vmem:[%s3661_s3] sm:$0xff]  ;;  %v578_v5 = vld [vmem:[%s3661_s3 + $0x10] sm:$0xff]  ;;  %v587_v30 = vld [vmem:[%s3661_s3 + $0x58] sm:$0xff] }
  0x69   :  { %442 = vmatpush1.bf16.msra.mxu0 %v316_v41  ;;  %v208_v41 = vld [vmem:[%s3659_s1 + $0x488] sm:$0xff]  ;;  %v580_v11 = vld [vmem:[%s3661_s3 + $0x20] sm:$0xff]  ;;  %v586_v29 = vld [vmem:[%s3661_s3 + $0x50] sm:$0xff] }
  0x6a   :  { %443 = vmatprep.subr.bf16.mxu0 %v319_v42  ;;  %v210_v42 = vld [vmem:[%s3659_s1 + $0x498] sm:$0xff]  ;;  %v600_v20 = vld [vmem:[%s3661_s3 + $0xc0] sm:$0xff]  ;;  %v589_v36 = vld [vmem:[%s3661_s3 + $0x68] sm:$0xff] }
  0x6b   :  { %v339_v44 = vpack.c.bf16 %v210_v42, %v208_v41  ;;  %v247_v41 = vld [vmem:[%s3659_s1 + $0x5c0] sm:$0xff]  ;;  %v249_v42 = vld [vmem:[%s3659_s1 + $0x5d0] sm:$0xff] }
  0x6c   :  { %v358_v45 = vpack.c.bf16 %v249_v42, %v247_v41  ;;  %v588_v35 = vld [vmem:[%s3661_s3 + $0x60] sm:$0xff]  ;;  %v591_v41 = vld [vmem:[%s3661_s3 + $0x78] sm:$0xff] }
  0x6d   :  { %444 = vmatpush1.bf16.msra.mxu0 %v318_v47  ;;  %v212_v47 = vld [vmem:[%s3659_s1 + $0x4a8] sm:$0xff] }
  0x6e   :  { %445 = vmatprep.subr.bf16.mxu0 %v321_v48  ;;  %v214_v48 = vld [vmem:[%s3659_s1 + $0x4b8] sm:$0xff] }
  0x6f   :  { %v341_v50 = vpack.c.bf16 %v214_v48, %v212_v47  ;;  %v251_v47 = vld [vmem:[%s3659_s1 + $0x5e0] sm:$0xff]  ;;  %v253_v48 = vld [vmem:[%s3659_s1 + $0x5f0] sm:$0xff] }
  0x70   :  { %v360_v51 = vpack.c.bf16 %v253_v48, %v251_v47  ;;  %v364_v47 = vld [vmem:[%s3660_s2] sm:$0x3] }
  0x71   :  { %446 = vmatpush1.bf16.msra.mxu0 %v320_v53  ;;  %v216_v53 = vld [vmem:[%s3659_s1 + $0x4c8] sm:$0xff] }
  0x72   :  { %447 = vmatprep.subr.bf16.mxu0 %v323_v54  ;;  %v218_v54 = vld [vmem:[%s3659_s1 + $0x4d8] sm:$0xff] }
  0x73   :  { %v343_v56 = vpack.c.bf16 %v218_v54, %v216_v53  ;;  %v60_v53 = vld [vmem:[%s3658_s0 + $0x58] sm:$0xff] }
  0x74   :  { %v263_v57 = vpack.c.bf16 %v60_v53, %v53_v52 }
  0x75   :  { %448 = vmatpush1.bf16.msra.mxu0 %v322_v59  ;;  %v220_v59 = vld [vmem:[%s3659_s1 + $0x4e8] sm:$0xff] }
  0x76   :  { %449 = vmatprep.subr.bf16.mxu0 %v325_v60  ;;  %v222_v60 = vld [vmem:[%s3659_s1 + $0x4f8] sm:$0xff] }
  0x77   :  { %v345_v62 = vpack.c.bf16 %v222_v60, %v220_v59  ;;  %v2063_v59 = vmov 0   ;;  %v55_v60 = vld [vmem:[%s3658_s0 + $0x30] sm:$0xff] }
  0x79   :  { %450 = vmatpush1.bf16.msra.mxu0 %v324_v1  ;;  %v224_v1 = vld [vmem:[%s3659_s1 + $0x508] sm:$0xff] }
  0x7a   :  { %451 = vmatprep.subr.bf16.mxu0 %v327_v2  ;;  %v226_v2 = vld [vmem:[%s3659_s1 + $0x518] sm:$0xff] }
  0x7b   :  { %v347_v4 = vpack.c.bf16 %v226_v2, %v224_v1  ;;  %v1834_v1 = vpack.c.bf16 %v577_v0, %v576_v63  ;;  %v594_v2 = vld [vmem:[%s3661_s3 + $0x90] sm:$0xff] }
  0x7d   :  { %452 = vmatpush1.bf16.msra.mxu0 %v326_v7  ;;  %v228_v7 = vld [vmem:[%s3659_s1 + $0x528] sm:$0xff]  ;;  %1835 = vmatpush3.bf16.msra.mxu1 %v1834_v1 }
  0x7e   :  { %453 = vmatprep.subr.bf16.mxu0 %v329_v8  ;;  %v230_v8 = vld [vmem:[%s3659_s1 + $0x538] sm:$0xff] }
  0x7f   :  { %v349_v10 = vpack.c.bf16 %v230_v8, %v228_v7  ;;  %v1838_v7 = vpack.c.bf16 %v579_v6, %v578_v5  ;;  %v596_v8 = vld [vmem:[%s3661_s3 + $0xa0] sm:$0xff] }
  0x81   :  { %454 = vmatpush1.bf16.msra.mxu0 %v328_v13  ;;  %v232_v13 = vld [vmem:[%s3659_s1 + $0x548] sm:$0xff] }
  0x82   :  { %466 = vmatprep.subr.bf16.mxu0 %v331_v17  ;;  %v351_v16 = vpack.c.bf16 %v234_v14, %v232_v13  ;;  %v231_v17 = vld [vmem:[%s3659_s1 + $0x540] sm:$0xff]  ;;  %v1842_v13 = vpack.c.bf16 %v581_v12, %v580_v11  ;;  %v598_v14 = vld [vmem:[%s3661_s3 + $0xb0] sm:$0xff]  ;;  %v703_v12 = vld [vmem:[%s3663_s5 + $0x8] sm:$0xff] }
  0x83   :  { %v350_v21 = vpack.c.bf16 %v233_v18, %v231_v17  ;;  %v582_v17 = vld [vmem:[%s3661_s3 + $0x30] sm:$0xff]  ;;  %v583_v18 = vld [vmem:[%s3661_s3 + $0x38] sm:$0xff]  ;;  %v702_v11 = vld [vmem:[%s3663_s5] sm:$0xff] }
  0x84   :  { %456 = vmatmul.mubr.bf16.vlgmr.msra.gmra.mrb[0].mxu0 %v261_v23  ;;  %v235_v23 = vld [vmem:[%s3659_s1 + $0x560] sm:$0xff]  ;;  %v1846_v19 = vpack.c.bf16 %v583_v18, %v582_v17 }
  0x85   :  { %467 = vmatpush1.bf16.msra.mxu0 %v330_v24  ;;  %498 = vmatprep.mubr.bf16.mxu0 %v264_v25  ;;  %v237_v24 = vld [vmem:[%s3659_s1 + $0x570] sm:$0xff]  ;;  %v240_v25 = vld [vmem:[%s3659_s1 + $0x588] sm:$0xff] }
  0x86   :  { %468 = vmatprep.subr.bf16.mxu0 %v333_v26  ;;  %v242_v26 = vld [vmem:[%s3659_s1 + $0x598] sm:$0xff]  ;;  %v352_v27 = vpack.c.bf16 %v237_v24, %v235_v23  ;;  %v584_v23 = vld [vmem:[%s3661_s3 + $0x40] sm:$0xff]  ;;  %v585_v24 = vld [vmem:[%s3661_s3 + $0x48] sm:$0xff] }
  0x87   :  { %v355_v28 = vpack.c.bf16 %v242_v26, %v240_v25  ;;  %v1850_v25 = vpack.c.bf16 %v585_v24, %v584_v23  ;;  %v602_v26 = vld [vmem:[%s3661_s3 + $0xd0] sm:$0xff] }
  0x89   :  { %469 = vmatpush1.bf16.msra.mxu0 %v332_v31  ;;  %v244_v31 = vld [vmem:[%s3659_s1 + $0x5a8] sm:$0xff] }
  0x8a   :  { %470 = vmatprep.subr.bf16.mxu0 %v335_v32  ;;  %v246_v32 = vld [vmem:[%s3659_s1 + $0x5b8] sm:$0xff] }
  0x8b   :  { %v357_v34 = vpack.c.bf16 %v246_v32, %v244_v31  ;;  %v1854_v31 = vpack.c.bf16 %v587_v30, %v586_v29  ;;  %v604_v32 = vld [vmem:[%s3661_s3 + $0xe0] sm:$0xff] }
  0x8d   :  { %471 = vmatpush1.bf16.msra.mxu0 %v334_v37  ;;  %v248_v37 = vld [vmem:[%s3659_s1 + $0x5c8] sm:$0xff] }
  0x8e   :  { %472 = vmatprep.subr.bf16.mxu0 %v337_v38  ;;  %v250_v38 = vld [vmem:[%s3659_s1 + $0x5d8] sm:$0xff] }
  0x8f   :  { %v359_v40 = vpack.c.bf16 %v250_v38, %v248_v37  ;;  %v606_v37 = vld [vmem:[%s3661_s3 + $0xf0] sm:$0xff]  ;;  %v1858_v38 = vpack.c.bf16 %v589_v36, %v588_v35 }
  0x91   :  { %473 = vmatpush1.bf16.msra.mxu0 %v336_v43  ;;  %v252_v43 = vld [vmem:[%s3659_s1 + $0x5e8] sm:$0xff] }
  0x92   :  { %474 = vmatprep.subr.bf16.mxu0 %v339_v44  ;;  %v254_v44 = vld [vmem:[%s3659_s1 + $0x5f8] sm:$0xff] }
  0x93   :  { %v361_v46 = vpack.c.bf16 %v254_v44, %v252_v43  ;;  %v366_v44 = vlaneseq }
  0x95   :  { %475 = vmatpush1.bf16.msra.mxu0 %v338_v49  ;;  %v256_v49 = vld [vmem:[%s3659_s1 + $0x608] sm:$0xff] }
  0x96   :  { %476 = vmatprep.subr.bf16.mxu0 %v341_v50  ;;  %v258_v50 = vld [vmem:[%s3659_s1 + $0x618] sm:$0xff] }
  0x97   :  { %v363_v54 = vpack.c.bf16 %v258_v50, %v256_v49 }
  0x99   :  { %477 = vmatpush1.bf16.msra.mxu0 %v340_v55  ;;  %v255_v55 = vld [vmem:[%s3659_s1 + $0x600] sm:$0xff] }
  0x9a   :  { %478 = vmatprep.subr.bf16.mxu0 %v343_v56  ;;  %v257_v56 = vld [vmem:[%s3659_s1 + $0x610] sm:$0xff] }
  0x9b   :  { %v362_v58 = vpack.c.bf16 %v257_v56, %v255_v55 }
  0x9d   :  { %479 = vmatpush1.bf16.msra.mxu0 %v342_v61  ;;  %v62_v61 = vld [vmem:[%s3658_s0 + $0x68] sm:$0xff] }
  0x9e   :  { %480 = vmatprep.subr.bf16.mxu0 %v345_v62  ;;  %v265_v62 = vpack.c.bf16 %v62_v61, %v55_v60 }
  0xa1   :  { %481 = vmatpush1.bf16.msra.mxu0 %v344_v3  ;;  %v595_v3 = vld [vmem:[%s3661_s3 + $0x98] sm:$0xff] }
  0xa2   :  { %482 = vmatprep.subr.bf16.mxu0 %v347_v4  ;;  %v1836_v4 = vpack.c.bf16 %v595_v3, %v594_v2 }
  0xa4   :  { %1837 = vmatprep.subr.bf16.mxu1 %v1836_v4 }
  0xa5   :  { %483 = vmatpush1.bf16.msra.mxu0 %v346_v9  ;;  %1839 = vmatpush3.bf16.msra.mxu1 %v1838_v7  ;;  %v597_v9 = vld [vmem:[%s3661_s3 + $0xa8] sm:$0xff] }
  0xa6   :  { %484 = vmatprep.subr.bf16.mxu0 %v349_v10  ;;  %v1840_v10 = vpack.c.bf16 %v597_v9, %v596_v8 }
  0xa8   :  { %1841 = vmatprep.subr.bf16.mxu1 %v1840_v10 }
  0xa9   :  { %485 = vmatpush1.bf16.msra.mxu0 %v348_v15  ;;  %1843 = vmatpush3.bf16.msra.mxu1 %v1842_v13  ;;  %v599_v15 = vld [vmem:[%s3661_s3 + $0xb8] sm:$0xff]  ;;  %v1864_v13 = vpack.c.bf16 %v703_v12, %v702_v11 }
  0xaa   :  { %486 = vmatprep.subr.bf16.mxu0 %v351_v16  ;;  %v1844_v16 = vpack.c.bf16 %v599_v15, %v598_v14  ;;  %v1716_v15 = vld [vmem:[%s3662_s4] ss:$0 sm:$0xff] }
  0xac   :  { %1845 = vmatprep.subr.bf16.mxu1 %v1844_v16 }
  0xad   :  { %487 = vmatpush1.bf16.msra.mxu0 %v350_v21  ;;  %1847 = vmatpush3.bf16.msra.mxu1 %v1846_v19  ;;  %v601_v21 = vld [vmem:[%s3661_s3 + $0xc8] sm:$0xff] }
  0xae   :  { %488 = vmatprep.subr.bf16.mxu0 %v353_v22  ;;  %v1848_v22 = vpack.c.bf16 %v601_v21, %v600_v20 }
  0xb0   :  { %1849 = vmatprep.subr.bf16.mxu1 %v1848_v22 }
  0xb1   :  { %489 = vmatpush1.bf16.msra.mxu0 %v352_v27  ;;  %1851 = vmatpush3.bf16.msra.mxu1 %v1850_v25  ;;  %v603_v27 = vld [vmem:[%s3661_s3 + $0xd8] sm:$0xff] }
  0xb2   :  { %490 = vmatprep.subr.bf16.mxu0 %v355_v28  ;;  %v1852_v28 = vpack.c.bf16 %v603_v27, %v602_v26 }
  0xb4   :  { %1853 = vmatprep.subr.bf16.mxu1 %v1852_v28 }
  0xb5   :  { %491 = vmatpush1.bf16.msra.mxu0 %v354_v33  ;;  %1855 = vmatpush3.bf16.msra.mxu1 %v1854_v31  ;;  %v605_v33 = vld [vmem:[%s3661_s3 + $0xe8] sm:$0xff]  ;;  %v807_v31 = vld [vmem:[%s3665_s7] sm:$0xff] }
  0xb6   :  { %492 = vmatprep.subr.bf16.mxu0 %v357_v34  ;;  %v1856_v34 = vpack.c.bf16 %v605_v33, %v604_v32  ;;  %v808_v32 = vld [vmem:[%s3665_s7 + $0x8] sm:$0x3] }
  0xb7   :  { %v1868_v33 = vpack.c.bf16 %v808_v32, %v807_v31 }
  0xb8   :  { %1857 = vmatprep.subr.bf16.mxu1 %v1856_v34  ;;  %v1719_v34 = vld [vmem:[%s3664_s6] ss:$0 sm:$0xff] }
  0xb9   :  { %493 = vmatpush1.bf16.msra.mxu0 %v356_v39  ;;  %v607_v39 = vld [vmem:[%s3661_s3 + $0xf8] sm:$0xff]  ;;  %1859 = vmatpush3.bf16.msra.mxu1 %v1858_v38 }
  0xba   :  { %494 = vmatprep.subr.bf16.mxu0 %v359_v40  ;;  %v590_v40 = vld [vmem:[%s3661_s3 + $0x70] sm:$0xff]  ;;  %v1860_v42 = vpack.c.bf16 %v607_v39, %v606_v37 }
  0xbb   :  { %v1862_v43 = vpack.c.bf16 %v591_v41, %v590_v40 }
  0xbc   :  { %1861 = vmatprep.subr.bf16.mxu1 %v1860_v42 }
  0xbd   :  { %495 = vmatpush1.bf16.msra.mxu0 %v358_v45  ;;  %1863 = vmatpush3.bf16.msra.mxu1 %v1862_v43  ;;  %v2874_v45 = vshrl.u32 %v366_v44, 7 }
  0xbe   :  { %496 = vmatprep.subr.bf16.mxu0 %v361_v46  ;;  %1865 = vmatprep.subr.bf16.mxu1 %v1864_v13 }
  0xbf   :  { %v2877_v46 = vsub.s32 0, %v2874_v45  ;;  %v2883_v48 = vsub.s32 1, %v2874_v45 }
  0xc1   :  { %497 = vmatpush1.bf16.msra.mxu0 %v360_v51  ;;  %v369_v49 = vrot.slane %v364_v47, %v2877_v46  ;;  %v373_v50 = vrot.slane %v364_v47, %v2883_v48 }
  0xc2   :  { %509 = vmatprep.subr.bf16.mxu0 %v363_v54 }
  0xc4   :  { %499 = vmatmul.mubr.bf16.vlgmr.msra.gmra.mrb[0].mxu0 %v263_v57 }
  0xc5   :  { %510 = vmatpush1.bf16.msra.mxu0 %v362_v58  ;;  %541 = vmatprep.mubr.bf16.mxu0 %v2063_v59 }
  0xd0   :  { %1711 = vmatmul.mubr.msk.bf16.vlgmr.msra.gmra.mrb[0].mxu0 %vm376_vm0, %v265_v62 }
 0x1a3   :  { %v543_v51 = vpop.f32.mrb[0].mxu0 }
 0x1a4   :  { %v1878_v52 = vadd.f32 %v543_v51, %v369_v49  ;;  %v545_v53 = vpop.f32.mrb[1].mxu0  ;;  %v916_v51 = vld [vmem:[%s3667_s9 + $0x18] sm:$0xff] }
 0x1a5   :  { %v1879_v54 = vadd.f32 %v545_v53, %v373_v50  ;;  %v547_v55 = vpop.f32.mrb[2].mxu0 }
 0x1a6   :  { %v1712_v56 = vmul.f32 -1.442695, %v1878_v52  ;;  %v1880_v57 = vadd.f32 %v547_v55, %v369_v49  ;;  %v549_v58 = vpop.f32.mrb[3].mxu0  ;;  %v913_v52 = vld [vmem:[%s3667_s9] sm:$0xff]  ;;  %v2065_v55 = vmov 0.0  }
 0x1a7   :  { %v1713_v59 = vmul.f32 -1.442695, %v1879_v54  ;;  %v1881_v60 = vadd.f32 %v549_v58, %v373_v50  ;;  %v914_v50 = vld [vmem:[%s3667_s9 + $0x8] sm:$0xff]  ;;  %v915_v54 = vld [vmem:[%s3667_s9 + $0x10] sm:$0xff]  ;;  %v1044_v58 = vld [vmem:[%s3669_s11 + $0x40] sm:$0xff] }
 0x1a8   :  { %1903 = vpow2.f32 %v1712_v56  ;;  %v1714_v61 = vmul.f32 -1.442695, %v1880_v57  ;;  %v1874_v53 = vpack.c.bf16 %v916_v51, %v914_v50  ;;  %v1876_v56 = vpack.c.bf16 %v915_v54, %v913_v52  ;;  %v1037_v57 = vld [vmem:[%s3669_s11 + $0x8] sm:$0xff]  ;;  %v1135_v51 = vld [vmem:[%s3669_s11 + $0x318] sm:$0xff]  ;;  %v1142_v52 = vld [vmem:[%s3669_s11 + $0x350] sm:$0xff] }
 0x1a9   :  { %1905 = vpow2.f32 %v1713_v59  ;;  %v1715_v62 = vmul.f32 -1.442695, %v1881_v60  ;;  %v1263_v59 = vpack.c.bf16 %v1044_v58, %v1037_v57  ;;  %v1724_v60 = vld [vmem:[%s3666_s8] ss:$0 sm:$0xff]  ;;  %v1134_v54 = vld [vmem:[%s3669_s11 + $0x310] sm:$0xff]  ;;  %v1149_v57 = vld [vmem:[%s3669_s11 + $0x388] sm:$0xff] }
 0x1aa   :  { %1907 = vpow2.f32 %v1714_v61  ;;  %v1156_v58 = vld [vmem:[%s3669_s11 + $0x3c0] sm:$0xff] }
 0x1ab   :  { %1909 = vpow2.f32 %v1715_v62 }
 0x1b2   :  { %v1904_v63 = vpop.eup %1903 }
 0x1b3   :  { %v1906_v0 = vpop.eup %1905  ;;  %v564_v1 = vadd.f32 1.0, %v1904_v63 }
 0x1b4   :  { %v1908_v2 = vpop.eup %1907  ;;  %v565_v3 = vadd.f32 1.0, %v1906_v0 }
 0x1b5   :  { %v1910_v4 = vpop.eup %1909  ;;  %v566_v6 = vadd.f32 1.0, %v1908_v2 }
 0x1b6   :  { %v567_v5 = vadd.f32 1.0, %v1910_v4  ;;  %1911 = vrcp.f32 %v565_v3 }
 0x1b7   :  { %1913 = vrcp.f32 %v564_v1 }
 0x1b8   :  { %1915 = vrcp.f32 %v567_v5 }
 0x1b9   :  { %1917 = vrcp.f32 %v566_v6 }
 0x1c0   :  { %v1912_v7 = vpop.eup %1911 }
 0x1c1   :  { %v1914_v8 = vpop.eup %1913  ;;  %679 = vmatprep.mubr.f32.mxu1 %v1912_v7  ;;  %v1036_v7 = vld [vmem:[%s3669_s11] sm:$0xff] }
 0x1c2   :  { %v1916_v9 = vpop.eup %1915  ;;  %680 = vmatmul.mubr.f32.vlgmr.msra.gmra.mrb[0].mxu1 %v1914_v8  ;;  %v1043_v8 = vld [vmem:[%s3669_s11 + $0x38] sm:$0xff] }
 0x1c3   :  { %684 = vmatprep.mubr.f32.mxu1 %v1916_v9  ;;  %v1918_v10 = vpop.eup %1917  ;;  %1867 = vmatpush3.bf16.msra.mxu1 %v1864_v13  ;;  %v1051_v9 = vld [vmem:[%s3669_s11 + $0x78] sm:$0xff]  ;;  %v1262_v11 = vpack.c.bf16 %v1043_v8, %v1036_v7  ;;  %v1050_v13 = vld [vmem:[%s3669_s11 + $0x70] sm:$0xff] }
 0x1c4   :  { %1870 = vmatprep.subr.msk.bf16.mxu1 %vm1869_vm3, %v1868_v33  ;;  %v1162_v8 = vld [vmem:[%s3669_s11 + $0x3f0] sm:$0xff] }
 0x1c6   :  { %685 = vmatmul.mubr.f32.gmra.mrb[2].mxu1 %v1918_v10  ;;  %v1058_v10 = vld [vmem:[%s3669_s11 + $0xb0] sm:$0xff] }
 0x1c7   :  { %v1270_v12 = vpack.c.bf16 %v1058_v10, %v1051_v9  ;;  %v1169_v9 = vld [vmem:[%s3669_s11 + $0x428] sm:$0xff]  ;;  %v1168_v10 = vld [vmem:[%s3669_s11 + $0x420] sm:$0xff] }
 0x295   :  { %v1782_v14 = vpop.f32.mrb[0].mxu1 }
 0x296   :  { %v1783_v16 = vpop.f32.mrb[1].mxu1 }
 0x297   :  { %v1784_v17 = vadd.f32 %v1783_v16, %v1782_v14  ;;  %v1057_v14 = vld [vmem:[%s3669_s11 + $0xa8] sm:$0xff] }
 0x298   :  { %v1065_v16 = vld [vmem:[%s3669_s11 + $0xe8] sm:$0xff] }
 0x299   :  { %v682_v18 = vadd.f32 %v1784_v17, %v1716_v15  ;;  %v1785_v19 = vpop.f32.mrb[2].mxu1  ;;  %v1072_v17 = vld [vmem:[%s3669_s11 + $0x120] sm:$0xff] }
 0x29a   :  { %v1786_v20 = vpop.f32.mrb[3].mxu1 }
 0x29b   :  { %v1717_v21 = vmul.f32 -1.442695, %v682_v18  ;;  %v1787_v22 = vadd.f32 %v1786_v20, %v1785_v19  ;;  %v1269_v18 = vpack.c.bf16 %v1057_v14, %v1050_v13  ;;  %v1277_v19 = vpack.c.bf16 %v1072_v17, %v1065_v16  ;;  %v1064_v20 = vld [vmem:[%s3669_s11 + $0xe0] sm:$0xff]  ;;  %v1063_v14 = vld [vmem:[%s3669_s11 + $0xd8] sm:$0xff]  ;;  %v1177_v17 = vld [vmem:[%s3669_s11 + $0x468] sm:$0xff] }
 0x29c   :  { %v1056_v13 = vld [vmem:[%s3669_s11 + $0xa0] sm:$0xff] }
 0x29d   :  { %1919 = vpow2.f32 %v1717_v21  ;;  %v687_v23 = vadd.f32 %v1787_v22, %v1716_v15  ;;  %v1071_v21 = vld [vmem:[%s3669_s11 + $0x118] sm:$0xff]  ;;  %v1275_v16 = vpack.c.bf16 %v1063_v14, %v1056_v13  ;;  %v1126_v13 = vld [vmem:[%s3669_s11 + $0x2d0] sm:$0xff]  ;;  %v1133_v14 = vld [vmem:[%s3669_s11 + $0x308] sm:$0xff] }
 0x29f   :  { %v1718_v24 = vmul.f32 -1.442695, %v687_v23  ;;  %v1079_v23 = vld [vmem:[%s3669_s11 + $0x158] sm:$0xff] }
 0x2a1   :  { %1921 = vpow2.f32 %v1718_v24  ;;  %v1086_v24 = vld [vmem:[%s3669_s11 + $0x190] sm:$0xff] }
 0x2a7   :  { %v1920_v25 = vpop.eup %1919 }
 0x2a8   :  { %v696_v26 = vadd.f32 1.0, %v1920_v25  ;;  %v1276_v25 = vpack.c.bf16 %v1071_v21, %v1064_v20  ;;  %v1176_v20 = vld [vmem:[%s3669_s11 + $0x460] sm:$0xff]  ;;  %v1183_v21 = vld [vmem:[%s3669_s11 + $0x498] sm:$0xff] }
 0x2aa   :  { %1923 = vrcp.f32 %v696_v26  ;;  %v1284_v26 = vpack.c.bf16 %v1086_v24, %v1079_v23  ;;  %v1332_v23 = vpack.c.bf16 %v1183_v21, %v1176_v20  ;;  %v1189_v24 = vld [vmem:[%s3669_s11 + $0x4c8] sm:$0xff]  ;;  %v1252_v21 = vld [vmem:[%s3669_s11 + $0x6c0] sm:$0xff] }
 0x2ab   :  { %v1922_v27 = vpop.eup %1921 }
 0x2ac   :  { %v697_v28 = vadd.f32 1.0, %v1922_v27  ;;  %v1078_v27 = vld [vmem:[%s3669_s11 + $0x150] sm:$0xff] }
 0x2ae   :  { %1925 = vrcp.f32 %v697_v28  ;;  %v1085_v28 = vld [vmem:[%s3669_s11 + $0x188] sm:$0xff] }
 0x2af   :  { %v1283_v31 = vpack.c.bf16 %v1085_v28, %v1078_v27 }
 0x2b4   :  { %v1924_v29 = vpop.eup %1923 }
 0x2b5   :  { %1822 = vmatprep.mubr.msk.f32.mxu1 %vm376_vm0, %v1924_v29  ;;  %v1093_v29 = vld [vmem:[%s3669_s11 + $0x1c8] sm:$0xff] }
 0x2b8   :  { %v1926_v30 = vpop.eup %1925 }
 0x2b9   :  { %1823 = vmatmul.mubr.msk.f32.vlgmr.msra.gmra.mrb[4].mxu1 %vm376_vm0, %v1926_v30  ;;  %v1100_v30 = vld [vmem:[%s3669_s11 + $0x200] sm:$0xff] }
 0x2ba   :  { %1873 = vmatpush3.bf16.msk.msra.mxu1 %vm1869_vm3, %v1868_v33  ;;  %v1291_v32 = vpack.c.bf16 %v1100_v30, %v1093_v29  ;;  %v1092_v33 = vld [vmem:[%s3669_s11 + $0x1c0] sm:$0xff]  ;;  %v1191_v29 = vld [vmem:[%s3669_s11 + $0x4d8] sm:$0xff]  ;;  %v1198_v30 = vld [vmem:[%s3669_s11 + $0x510] sm:$0xff] }
 0x2bb   :  { %1875 = vmatprep.subr.bf16.mxu1 %v1874_v53  ;;  %v1312_v53 = vpack.c.bf16 %v1142_v52, %v1135_v51  ;;  %v1217_v51 = vld [vmem:[%s3669_s11 + $0x5a8] sm:$0xff]  ;;  %v1098_v52 = vld [vmem:[%s3669_s11 + $0x1f0] sm:$0xff] }
 0x38c   :  { %v1824_v35 = vpop.f32.mrb[4].mxu1 }
 0x38d   :  { %v789_v36 = vadd.f32 %v1824_v35, %v1719_v34  ;;  %v783_v37 = vpop.f32.mrb[5].mxu1  ;;  %v1107_v35 = vld [vmem:[%s3669_s11 + $0x238] sm:$0xff] }
 0x38e   :  { %v784_v38 = vadd.f32 %v1719_v34, %v783_v37  ;;  %v1099_v34 = vld [vmem:[%s3669_s11 + $0x1f8] sm:$0xff] }
 0x38f   :  { %v1723_v39 = vmul.f32 -1.442695, %v789_v36  ;;  %v1114_v36 = vld [vmem:[%s3669_s11 + $0x270] sm:$0xff]  ;;  %v1290_v37 = vpack.c.bf16 %v1099_v34, %v1092_v33  ;;  %v1197_v33 = vld [vmem:[%s3669_s11 + $0x508] sm:$0xff]  ;;  %v1196_v34 = vld [vmem:[%s3669_s11 + $0x500] sm:$0xff] }
 0x390   :  { %v1722_v40 = vmul.f32 -1.442695, %v784_v38  ;;  %v1298_v38 = vpack.c.bf16 %v1114_v36, %v1107_v35  ;;  %v1203_v36 = vld [vmem:[%s3669_s11 + $0x538] sm:$0xff] }
 0x391   :  { %1927 = vpow2.f32 %v1723_v39  ;;  %v1106_v39 = vld [vmem:[%s3669_s11 + $0x230] sm:$0xff] }
 0x392   :  { %1929 = vpow2.f32 %v1722_v40  ;;  %v1113_v40 = vld [vmem:[%s3669_s11 + $0x268] sm:$0xff] }
 0x39b   :  { %v1928_v41 = vpop.eup %1927 }
 0x39c   :  { %v1930_v42 = vpop.eup %1929  ;;  %v799_v43 = vadd.f32 1.0, %v1928_v41  ;;  %v1121_v41 = vld [vmem:[%s3669_s11 + $0x2a8] sm:$0xff] }
 0x39d   :  { %v798_v44 = vadd.f32 1.0, %v1930_v42  ;;  %v1128_v42 = vld [vmem:[%s3669_s11 + $0x2e0] sm:$0xff] }
 0x39e   :  { %1931 = vrcp.f32 %v799_v43  ;;  %v1297_v43 = vpack.c.bf16 %v1113_v40, %v1106_v39  ;;  %v1345_v39 = vpack.c.bf16 %v1203_v36, %v1196_v34 }
 0x39f   :  { %1933 = vrcp.f32 %v798_v44  ;;  %v1305_v44 = vpack.c.bf16 %v1128_v42, %v1121_v41  ;;  %v1205_v41 = vld [vmem:[%s3669_s11 + $0x548] sm:$0xff]  ;;  %v1212_v42 = vld [vmem:[%s3669_s11 + $0x580] sm:$0xff] }
 0x3a8   :  { %v1932_v47 = vpop.eup %1931 }
 0x3a9   :  { %v1934_v49 = vpop.eup %1933  ;;  %806 = vst.msk [vmem:[#allocation2 + $0x8] sm:$0xff] %vm804_vm4, %v1932_v47 }
 0x3aa   :  { %1829 = vmatprep.mubr.msk.f32.mxu1 %vm804_vm4, %v1934_v49  ;;  %805 = vst.msk [vmem:[#allocation2] sm:$0xff] %vm804_vm4, %v1934_v49  ;;  %v1127_v49 = vld [vmem:[%s3669_s11 + $0x2d8] sm:$0xff] }
 0x3ab   :  { %1830 = vmatmul.mubr.msk.f32.vlgmr.msra.gmra.mrb[6].mxu1 %vm804_vm4, %v1932_v47  ;;  %v1120_v47 = vld [vmem:[%s3669_s11 + $0x2a0] sm:$0xff] }
 0x3ac   :  { %999 = vmatprep.mubr.f32.mxu1 %v2065_v55  ;;  %1877 = vmatpush1.bf16.msra.mxu1 %v1876_v56  ;;  %v1304_v50 = vpack.c.bf16 %v1127_v49, %v1120_v47  ;;  %v1211_v47 = vld [vmem:[%s3669_s11 + $0x578] sm:$0xff]  ;;  %v1210_v49 = vld [vmem:[%s3669_s11 + $0x570] sm:$0xff] }
 0x3ad   :  { %1411 = vmatprep.subr.bf16.mxu1 %v1263_v59  ;;  %v1319_v59 = vpack.c.bf16 %v1156_v58, %v1149_v57  ;;  %v1226_v57 = vld [vmem:[%s3669_s11 + $0x5f0] sm:$0xff] }
 0x47e   :  { %v1831_v61 = vpop.f32.mrb[6].mxu1 }
 0x47f   :  { %v898_v62 = vadd.f32 %v1831_v61, %v1724_v60  ;;  %v892_v63 = vpop.f32.mrb[7].mxu1  ;;  %v1155_v61 = vld [vmem:[%s3669_s11 + $0x3b8] sm:$0xff] }
 0x480   :  { %v893_v0 = vadd.f32 %v1724_v60, %v892_v63  ;;  %v1148_v60 = vld [vmem:[%s3669_s11 + $0x380] sm:$0xff] }
 0x481   :  { %v1729_v1 = vmul.f32 -1.442695, %v898_v62  ;;  %v1154_v62 = vld [vmem:[%s3669_s11 + $0x3b0] sm:$0xff]  ;;  %v1318_v63 = vpack.c.bf16 %v1155_v61, %v1148_v60  ;;  %v1225_v60 = vld [vmem:[%s3669_s11 + $0x5e8] sm:$0xff]  ;;  %v1224_v61 = vld [vmem:[%s3669_s11 + $0x5e0] sm:$0xff] }
 0x482   :  { %v1728_v2 = vmul.f32 -1.442695, %v893_v0  ;;  %v1161_v0 = vld [vmem:[%s3669_s11 + $0x3e8] sm:$0xff] }
 0x483   :  { %1935 = vpow2.f32 %v1729_v1  ;;  %v1042_v1 = vld [vmem:[%s3669_s11 + $0x30] sm:$0xff] }
 0x484   :  { %1937 = vpow2.f32 %v1728_v2  ;;  %v1049_v2 = vld [vmem:[%s3669_s11 + $0x68] sm:$0xff] }
 0x48d   :  { %v1936_v3 = vpop.eup %1935 }
 0x48e   :  { %v1938_v4 = vpop.eup %1937  ;;  %v908_v6 = vadd.f32 1.0, %v1936_v3  ;;  %v1324_v3 = vpack.c.bf16 %v1161_v0, %v1154_v62  ;;  %v1112_v0 = vld [vmem:[%s3669_s11 + $0x260] sm:$0xff] }
 0x48f   :  { %v907_v5 = vadd.f32 1.0, %v1938_v4  ;;  %v1268_v4 = vpack.c.bf16 %v1049_v2, %v1042_v1  ;;  %v1119_v1 = vld [vmem:[%s3669_s11 + $0x298] sm:$0xff] }
 0x490   :  { %1796 = vmatprep.subr.bf16.mxu0 %v1324_v3  ;;  %v1303_v3 = vpack.c.bf16 %v1119_v1, %v1112_v0 }
 0x491   :  { %1939 = vrcp.f32 %v907_v5  ;;  %v1163_v5 = vld [vmem:[%s3669_s11 + $0x3f8] sm:$0xff]  ;;  %1797 = vmatpush3.bf16.msra.mxu0 %v1268_v4  ;;  %v1233_v4 = vld [vmem:[%s3669_s11 + $0x628] sm:$0xff] }
 0x492   :  { %1941 = vrcp.f32 %v908_v6  ;;  %v1170_v6 = vld [vmem:[%s3669_s11 + $0x430] sm:$0xff] }
 0x493   :  { %v1326_v7 = vpack.c.bf16 %v1170_v6, %v1163_v5  ;;  %v1240_v5 = vld [vmem:[%s3669_s11 + $0x660] sm:$0xff] }
 0x494   :  { %v1232_v6 = vld [vmem:[%s3669_s11 + $0x620] sm:$0xff] }
 0x49b   :  { %v1940_v15 = vpop.eup %1939 }
 0x49c   :  { %1730 = vmatmul.mubr.msk.f32.vlgmr.msra.gmra.mrb[8].mxu1 %vm376_vm0, %v1940_v15  ;;  %v1942_v22 = vpop.eup %1941 }
 0x49d   :  { %1005 = vmatprep.mubr.f32.mxu1 %v2065_v55  ;;  %1412 = vmatpush1.bf16.msra.mxu1 %v1262_v11  ;;  %v1141_v55 = vld [vmem:[%s3669_s11 + $0x348] sm:$0xff]  ;;  %v1325_v11 = vpack.c.bf16 %v1169_v9, %v1162_v8  ;;  %v1239_v8 = vld [vmem:[%s3669_s11 + $0x658] sm:$0xff]  ;;  %v1238_v9 = vld [vmem:[%s3669_s11 + $0x650] sm:$0xff] }
 0x49e   :  { %1413 = vmatprep.subr.bf16.mxu1 %v1270_v12  ;;  %v1311_v56 = vpack.c.bf16 %v1141_v55, %v1134_v54  ;;  %v1175_v12 = vld [vmem:[%s3669_s11 + $0x458] sm:$0xff]  ;;  %v1352_v54 = vpack.c.bf16 %v1217_v51, %v1210_v49 }
 0x49f   :  { %v1331_v15 = vpack.c.bf16 %v1175_v12, %v1168_v10  ;;  %v1245_v10 = vld [vmem:[%s3669_s11 + $0x688] sm:$0xff] }
 0x4a0   :  { %1731 = vmatmul.mubr.msk.f32.gmra.mrb[10].mxu1 %vm376_vm0, %v1942_v22  ;;  %v1182_v22 = vld [vmem:[%s3669_s11 + $0x490] sm:$0xff]  ;;  %v1366_v12 = vpack.c.bf16 %v1245_v10, %v1238_v9 }
 0x4a1   :  { %1414 = vmatpush1.bf16.msra.mxu1 %v1269_v18  ;;  %v1184_v18 = vld [vmem:[%s3669_s11 + $0x4a0] sm:$0xff]  ;;  %1798 = vmatprep.subr.bf16.mxu0 %v1331_v15  ;;  %v1338_v27 = vpack.c.bf16 %v1189_v24, %v1182_v22  ;;  %v1247_v15 = vld [vmem:[%s3669_s11 + $0x698] sm:$0xff] }
 0x4a2   :  { %1415 = vmatprep.subr.bf16.mxu1 %v1277_v19  ;;  %v1333_v19 = vpack.c.bf16 %v1184_v18, %v1177_v17  ;;  %1799 = vmatpush3.bf16.msra.mxu0 %v1275_v16  ;;  %v1310_v16 = vpack.c.bf16 %v1133_v14, %v1126_v13  ;;  %v1254_v17 = vld [vmem:[%s3669_s11 + $0x6d0] sm:$0xff]  ;;  %v1259_v22 = vld [vmem:[%s3669_s11 + $0x6f8] sm:$0xff]  ;;  %v1081_v13 = vld [vmem:[%s3669_s11 + $0x168] sm:$0xff] }
 0x4a3   :  { %1800 = vmatprep.subr.bf16.mxu0 %v1338_v27  ;;  %v1246_v18 = vld [vmem:[%s3669_s11 + $0x690] sm:$0xff]  ;;  %v1368_v20 = vpack.c.bf16 %v1254_v17, %v1247_v15  ;;  %v1088_v14 = vld [vmem:[%s3669_s11 + $0x1a0] sm:$0xff] }
 0x4a4   :  { %v1080_v17 = vld [vmem:[%s3669_s11 + $0x160] sm:$0xff] }
 0x4a5   :  { %1416 = vmatpush1.bf16.msra.mxu1 %v1276_v25  ;;  %v1070_v25 = vld [vmem:[%s3669_s11 + $0x110] sm:$0xff] }
 0x4a6   :  { %1417 = vmatprep.subr.bf16.mxu1 %v1284_v26  ;;  %v1077_v26 = vld [vmem:[%s3669_s11 + $0x148] sm:$0xff] }
 0x4a7   :  { %v1282_v28 = vpack.c.bf16 %v1077_v26, %v1070_v25  ;;  %v1373_v25 = vpack.c.bf16 %v1259_v22, %v1252_v21  ;;  %v1147_v26 = vld [vmem:[%s3669_s11 + $0x378] sm:$0xff] }
 0x4a9   :  { %1418 = vmatpush1.bf16.msra.mxu1 %v1283_v31  ;;  %v1340_v31 = vpack.c.bf16 %v1198_v30, %v1191_v29  ;;  %1801 = vmatpush3.bf16.msra.mxu0 %v1282_v28  ;;  %v1039_v28 = vld [vmem:[%s3669_s11 + $0x18] sm:$0xff]  ;;  %v1046_v29 = vld [vmem:[%s3669_s11 + $0x50] sm:$0xff] }
 0x4aa   :  { %1419 = vmatprep.subr.bf16.mxu1 %v1291_v32  ;;  %v1190_v32 = vld [vmem:[%s3669_s11 + $0x4d0] sm:$0xff]  ;;  %1802 = vmatprep.subr.bf16.mxu0 %v1345_v39  ;;  %v1265_v30 = vpack.c.bf16 %v1046_v29, %v1039_v28  ;;  %v1108_v29 = vld [vmem:[%s3669_s11 + $0x240] sm:$0xff] }
 0x4ab   :  { %v1339_v35 = vpack.c.bf16 %v1197_v33, %v1190_v32 }
 0x4ad   :  { %1420 = vmatpush1.bf16.msra.mxu1 %v1290_v37  ;;  %v1084_v37 = vld [vmem:[%s3669_s11 + $0x180] sm:$0xff] }
 0x4ae   :  { %1421 = vmatprep.subr.bf16.mxu1 %v1298_v38  ;;  %v1091_v38 = vld [vmem:[%s3669_s11 + $0x1b8] sm:$0xff] }
 0x4af   :  { %v1289_v40 = vpack.c.bf16 %v1091_v38, %v1084_v37 }
 0x4b1   :  { %1422 = vmatpush1.bf16.msra.mxu1 %v1297_v43  ;;  %v1347_v43 = vpack.c.bf16 %v1212_v42, %v1205_v41  ;;  %1803 = vmatpush3.bf16.msra.mxu0 %v1289_v40 }
 0x4b2   :  { %1423 = vmatprep.subr.bf16.mxu1 %v1305_v44  ;;  %v1204_v44 = vld [vmem:[%s3669_s11 + $0x540] sm:$0xff]  ;;  %1804 = vmatprep.subr.bf16.mxu0 %v1352_v54 }
 0x4b5   :  { %1424 = vmatpush1.bf16.msra.mxu1 %v1304_v50  ;;  %v1346_v50 = vpack.c.bf16 %v1211_v47, %v1204_v44 }
 0x4b6   :  { %1425 = vmatprep.subr.bf16.mxu1 %v1312_v53  ;;  %v1105_v53 = vld [vmem:[%s3669_s11 + $0x228] sm:$0xff] }
 0x4b7   :  { %v1296_v55 = vpack.c.bf16 %v1105_v53, %v1098_v52 }
 0x4b9   :  { %1426 = vmatpush1.bf16.msra.mxu1 %v1311_v56  ;;  %v1219_v56 = vld [vmem:[%s3669_s11 + $0x5b8] sm:$0xff]  ;;  %1805 = vmatpush3.bf16.msra.mxu0 %v1296_v55 }
 0x4ba   :  { %1427 = vmatprep.subr.bf16.mxu1 %v1319_v59  ;;  %v1354_v58 = vpack.c.bf16 %v1226_v57, %v1219_v56  ;;  %v1218_v59 = vld [vmem:[%s3669_s11 + $0x5b0] sm:$0xff] }
 0x4bb   :  { %v1353_v62 = vpack.c.bf16 %v1225_v60, %v1218_v59  ;;  %v1038_v59 = vld [vmem:[%s3669_s11 + $0x10] sm:$0xff]  ;;  %v1045_v60 = vld [vmem:[%s3669_s11 + $0x48] sm:$0xff] }
 0x4bd   :  { %1428 = vmatpush1.bf16.msra.mxu1 %v1318_v63  ;;  %v1231_v63 = vld [vmem:[%s3669_s11 + $0x618] sm:$0xff] }
 0x4be   :  { %1429 = vmatprep.subr.bf16.mxu1 %v1326_v7  ;;  %v1359_v2 = vpack.c.bf16 %v1231_v63, %v1224_v61  ;;  %v1361_v7 = vpack.c.bf16 %v1240_v5, %v1233_v4  ;;  %v1060_v63 = vld [vmem:[%s3669_s11 + $0xc0] sm:$0xff] }
 0x4bf   :  { %v1052_v5 = vld [vmem:[%s3669_s11 + $0x80] sm:$0xff] }
 0x4c0   :  { %1806 = vmatprep.subr.bf16.mxu0 %v1359_v2 }
 0x4c1   :  { %1430 = vmatpush1.bf16.msra.mxu1 %v1325_v11  ;;  %v1360_v11 = vpack.c.bf16 %v1239_v8, %v1232_v6  ;;  %1807 = vmatpush3.bf16.msra.mxu0 %v1303_v3  ;;  %v1264_v3 = vpack.c.bf16 %v1045_v60, %v1038_v59  ;;  %v1059_v6 = vld [vmem:[%s3669_s11 + $0xb8] sm:$0xff]  ;;  %v1074_v8 = vld [vmem:[%s3669_s11 + $0x130] sm:$0xff] }
 0x4c2   :  { %1431 = vmatprep.subr.bf16.mxu1 %v1333_v19  ;;  %v1253_v19 = vld [vmem:[%s3669_s11 + $0x6c8] sm:$0xff]  ;;  %1808 = vmatprep.subr.bf16.mxu0 %v1366_v12  ;;  %v1271_v9 = vpack.c.bf16 %v1059_v6, %v1052_v5  ;;  %v1186_v59 = vld [vmem:[%s3669_s11 + $0x4b0] sm:$0xff]  ;;  %v1192_v6 = vld [vmem:[%s3669_s11 + $0x4e0] sm:$0xff] }
 0x4c3   :  { %v1367_v24 = vpack.c.bf16 %v1253_v19, %v1246_v18  ;;  %v1073_v12 = vld [vmem:[%s3669_s11 + $0x128] sm:$0xff]  ;;  %v1087_v18 = vld [vmem:[%s3669_s11 + $0x198] sm:$0xff] }
 0x4c4   :  { %v1095_v19 = vld [vmem:[%s3669_s11 + $0x1d8] sm:$0xff]  ;;  %v1285_v21 = vpack.c.bf16 %v1087_v18, %v1080_v17  ;;  %v1220_v18 = vld [vmem:[%s3669_s11 + $0x5c0] sm:$0xff] }
 0x4c5   :  { %1432 = vmatpush1.bf16.msra.mxu1 %v1332_v23  ;;  %v1140_v23 = vld [vmem:[%s3669_s11 + $0x340] sm:$0xff]  ;;  %1809 = vmatpush3.bf16.msra.mxu0 %v1310_v16  ;;  %v1286_v16 = vpack.c.bf16 %v1088_v14, %v1081_v13  ;;  %v1213_v13 = vld [vmem:[%s3669_s11 + $0x588] sm:$0xff] }
 0x4c6   :  { %1433 = vmatprep.subr.bf16.mxu1 %v1340_v31  ;;  %v1317_v27 = vpack.c.bf16 %v1147_v26, %v1140_v23  ;;  %1810 = vmatprep.subr.bf16.mxu0 %v1373_v25  ;;  %v917_v31 = vld [vmem:[%s3668_s10] sm:$0x3]  ;;  %v1094_v23 = vld [vmem:[%s3669_s11 + $0x1d0] sm:$0xff]  ;;  %v1109_v25 = vld [vmem:[%s3669_s11 + $0x248] sm:$0xff] }
 0x4c7   :  { %v922_v32 = vrot.slane %v917_v31, %v2877_v46  ;;  %v926_v33 = vrot.slane %v917_v31, %v2883_v48  ;;  %v1116_v26 = vld [vmem:[%s3669_s11 + $0x280] sm:$0xff]  ;;  %v1123_v31 = vld [vmem:[%s3669_s11 + $0x2b8] sm:$0xff]  ;;  %v1221_v14 = vld [vmem:[%s3669_s11 + $0x5c8] sm:$0xff] }
 0x4c8   :  { %v1300_v28 = vpack.c.bf16 %v1116_v26, %v1109_v25  ;;  %v1241_v25 = vld [vmem:[%s3669_s11 + $0x668] sm:$0xff] }
 0x4c9   :  { %1434 = vmatpush1.bf16.msra.mxu1 %v1339_v35  ;;  %1811 = vmatpush3.bf16.msra.mxu0 %v1317_v27  ;;  %v1249_v26 = vld [vmem:[%s3669_s11 + $0x6a8] sm:$0xff] }
 0x4ca   :  { %1435 = vmatprep.subr.bf16.mxu1 %v1347_v43 }
 0x4cd   :  { %1436 = vmatpush1.bf16.msra.mxu1 %v1346_v50 }
 0x4ce   :  { %1437 = vmatprep.subr.bf16.mxu1 %v1354_v58 }
 0x4d1   :  { %1438 = vmatpush1.bf16.msra.mxu1 %v1353_v62  ;;  %v1053_v62 = vld [vmem:[%s3669_s11 + $0x88] sm:$0xff] }
 0x4d2   :  { %1439 = vmatprep.subr.bf16.mxu1 %v1361_v7  ;;  %v1272_v4 = vpack.c.bf16 %v1060_v63, %v1053_v62  ;;  %v1067_v7 = vld [vmem:[%s3669_s11 + $0xf8] sm:$0xff]  ;;  %v1178_v62 = vld [vmem:[%s3669_s11 + $0x470] sm:$0xff]  ;;  %v1185_v63 = vld [vmem:[%s3669_s11 + $0x4a8] sm:$0xff] }
 0x4d3   :  { %v1279_v10 = vpack.c.bf16 %v1074_v8, %v1067_v7  ;;  %v1199_v7 = vld [vmem:[%s3669_s11 + $0x518] sm:$0xff] }
 0x4d4   :  { %v1207_v8 = vld [vmem:[%s3669_s11 + $0x558] sm:$0xff] }
 0x4d5   :  { %1440 = vmatpush1.bf16.msra.mxu1 %v1360_v11  ;;  %v1066_v11 = vld [vmem:[%s3669_s11 + $0xf0] sm:$0xff] }
 0x4d6   :  { %1441 = vmatprep.subr.bf16.mxu1 %v1368_v20  ;;  %v1278_v15 = vpack.c.bf16 %v1073_v12, %v1066_v11  ;;  %v1102_v20 = vld [vmem:[%s3669_s11 + $0x210] sm:$0xff] }
 0x4d7   :  { %v1293_v22 = vpack.c.bf16 %v1102_v20, %v1095_v19  ;;  %v1206_v12 = vld [vmem:[%s3669_s11 + $0x550] sm:$0xff]  ;;  %v1227_v19 = vld [vmem:[%s3669_s11 + $0x5f8] sm:$0xff] }
 0x4d8   :  { %v1235_v20 = vld [vmem:[%s3669_s11 + $0x638] sm:$0xff] }
 0x4d9   :  { %1442 = vmatpush1.bf16.msra.mxu1 %v1367_v24  ;;  %v1101_v24 = vld [vmem:[%s3669_s11 + $0x208] sm:$0xff] }
 0x4da   :  { %1454 = vmatprep.subr.bf16.mxu1 %v1265_v30  ;;  %v1292_v27 = vpack.c.bf16 %v1101_v24, %v1094_v23  ;;  %v1115_v30 = vld [vmem:[%s3669_s11 + $0x278] sm:$0xff]  ;;  %v1234_v24 = vld [vmem:[%s3669_s11 + $0x630] sm:$0xff] }
 0x56f   :  { %v1001_v34 = vpop.f32.mrb[8].mxu1 }
 0x570   :  { %v1002_v35 = vadd.f32 %v1001_v34, %v922_v32  ;;  %v1003_v36 = vpop.f32.mrb[9].mxu1 }
 0x571   :  { %v1004_v37 = vadd.f32 %v1003_v36, %v926_v33  ;;  %v1129_v36 = vld [vmem:[%s3669_s11 + $0x2e8] sm:$0xff] }
 0x572   :  { %v1732_v38 = vmul.f32 -1.442695, %v1002_v35  ;;  %v1122_v35 = vld [vmem:[%s3669_s11 + $0x2b0] sm:$0xff] }
 0x573   :  { %v1733_v39 = vmul.f32 -1.442695, %v1004_v37  ;;  %v1007_v40 = vpop.f32.mrb[10].mxu1  ;;  %v1137_v37 = vld [vmem:[%s3669_s11 + $0x328] sm:$0xff] }
 0x574   :  { %1943 = vpow2.f32 %v1732_v38  ;;  %v1008_v41 = vadd.f32 %v1007_v40, %v922_v32  ;;  %v1009_v42 = vpop.f32.mrb[11].mxu1  ;;  %v1130_v32 = vld [vmem:[%s3669_s11 + $0x2f0] sm:$0xff]  ;;  %v1144_v38 = vld [vmem:[%s3669_s11 + $0x360] sm:$0xff] }
 0x575   :  { %1945 = vpow2.f32 %v1733_v39  ;;  %v1010_v43 = vadd.f32 %v1009_v42, %v926_v33  ;;  %v1299_v33 = vpack.c.bf16 %v1115_v30, %v1108_v29  ;;  %v1307_v34 = vpack.c.bf16 %v1130_v32, %v1123_v31  ;;  %v1143_v42 = vld [vmem:[%s3669_s11 + $0x358] sm:$0xff]  ;;  %v1248_v30 = vld [vmem:[%s3669_s11 + $0x6a0] sm:$0xff]  ;;  %v1041_v32 = vld [vmem:[%s3669_s11 + $0x28] sm:$0xff] }
 0x576   :  { %v1734_v44 = vmul.f32 -1.442695, %v1008_v41  ;;  %v1306_v39 = vpack.c.bf16 %v1129_v36, %v1122_v35  ;;  %v1314_v40 = vpack.c.bf16 %v1144_v38, %v1137_v37  ;;  %v1136_v41 = vld [vmem:[%s3669_s11 + $0x320] sm:$0xff]  ;;  %v1255_v31 = vld [vmem:[%s3669_s11 + $0x6d8] sm:$0xff] }
 0x577   :  { %v1735_v47 = vmul.f32 -1.442695, %v1010_v43  ;;  %v1151_v43 = vld [vmem:[%s3669_s11 + $0x398] sm:$0xff]  ;;  %v1040_v36 = vld [vmem:[%s3669_s11 + $0x20] sm:$0xff] }
 0x578   :  { %1947 = vpow2.f32 %v1734_v44  ;;  %v1158_v44 = vld [vmem:[%s3669_s11 + $0x3d0] sm:$0xff]  ;;  %v1047_v37 = vld [vmem:[%s3669_s11 + $0x58] sm:$0xff] }
 0x579   :  { %1949 = vpow2.f32 %v1735_v47  ;;  %v1313_v47 = vpack.c.bf16 %v1143_v42, %v1136_v41  ;;  %v1055_v38 = vld [vmem:[%s3669_s11 + $0x98] sm:$0xff]  ;;  %v1054_v42 = vld [vmem:[%s3669_s11 + $0x90] sm:$0xff] }
 0x57e   :  { %v1944_v49 = vpop.eup %1943 }
 0x57f   :  { %v1946_v50 = vpop.eup %1945  ;;  %v1024_v51 = vadd.f32 1.0, %v1944_v49  ;;  %v1321_v49 = vpack.c.bf16 %v1158_v44, %v1151_v43  ;;  %v1061_v43 = vld [vmem:[%s3669_s11 + $0xc8] sm:$0xff] }
 0x580   :  { %v1025_v52 = vadd.f32 1.0, %v1946_v50  ;;  %v1150_v50 = vld [vmem:[%s3669_s11 + $0x390] sm:$0xff]  ;;  %v1069_v44 = vld [vmem:[%s3669_s11 + $0x108] sm:$0xff] }
 0x581   :  { %1951 = vrcp.f32 %v1024_v51  ;;  %v1157_v51 = vld [vmem:[%s3669_s11 + $0x3c8] sm:$0xff] }
 0x582   :  { %v1948_v53 = vpop.eup %1947  ;;  %1953 = vrcp.f32 %v1025_v52  ;;  %v1165_v52 = vld [vmem:[%s3669_s11 + $0x408] sm:$0xff] }
 0x583   :  { %v1950_v54 = vpop.eup %1949  ;;  %v1026_v55 = vadd.f32 1.0, %v1948_v53  ;;  %v1172_v53 = vld [vmem:[%s3669_s11 + $0x440] sm:$0xff] }
 0x584   :  { %v1027_v56 = vadd.f32 1.0, %v1950_v54  ;;  %v1320_v54 = vpack.c.bf16 %v1157_v51, %v1150_v50  ;;  %v1068_v51 = vld [vmem:[%s3669_s11 + $0x100] sm:$0xff] }
 0x585   :  { %1955 = vrcp.f32 %v1026_v55  ;;  %v1328_v55 = vpack.c.bf16 %v1172_v53, %v1165_v52  ;;  %v1075_v52 = vld [vmem:[%s3669_s11 + $0x138] sm:$0xff] }
 0x586   :  { %1957 = vrcp.f32 %v1027_v56  ;;  %v1164_v56 = vld [vmem:[%s3669_s11 + $0x400] sm:$0xff]  ;;  %v1083_v53 = vld [vmem:[%s3669_s11 + $0x178] sm:$0xff] }
 0x58b   :  { %v1952_v57 = vpop.eup %1951 }
 0x58c   :  { %v1954_v58 = vpop.eup %1953 }
 0x58f   :  { %v1956_v61 = vpop.eup %1955 }
 0x590   :  { %v1958_v0 = vpop.eup %1957  ;;  %v3235_v1 = vpack.c.bf16 %v1956_v61, %v1952_v57  ;;  %v1171_v57 = vld [vmem:[%s3669_s11 + $0x438] sm:$0xff] }
 0x591   :  { %v3237_v2 = vpack.c.bf16 %v1958_v0, %v1954_v58  ;;  %v1179_v58 = vld [vmem:[%s3669_s11 + $0x478] sm:$0xff]  ;;  %v1327_v60 = vpack.c.bf16 %v1171_v57, %v1164_v56  ;;  %v1193_v0 = vld [vmem:[%s3669_s11 + $0x4e8] sm:$0xff]  ;;  %v1082_v56 = vld [vmem:[%s3669_s11 + $0x170] sm:$0xff] }
 0x592   :  { %v1335_v61 = vpack.c.bf16 %v1186_v59, %v1179_v58  ;;  %v1089_v57 = vld [vmem:[%s3669_s11 + $0x1a8] sm:$0xff]  ;;  %v1104_v59 = vld [vmem:[%s3669_s11 + $0x220] sm:$0xff] }
 0x593   :  { %1443 = vmatprep.mubr.bf16.mxu1 %v3237_v2  ;;  %1572 = vmatprep.mubr.bf16.mxu0 %v3237_v2  ;;  %v1097_v58 = vld [vmem:[%s3669_s11 + $0x1e8] sm:$0xff] }
 0x594   :  { %1444 = vmatmul.mubr.bf16.vlgmr.msra.gmra.mrb[12].mxu1 %v3235_v1  ;;  %1573 = vmatmul.mubr.bf16.vlgmr.msra.gmra.mrb[4].mxu0 %v3235_v1 }
 0x595   :  { %1455 = vmatpush1.bf16.msra.mxu1 %v1264_v3  ;;  %1486 = vmatprep.mubr.bf16.mxu1 %v3237_v2  ;;  %v1200_v3 = vld [vmem:[%s3669_s11 + $0x520] sm:$0xff] }
 0x596   :  { %1456 = vmatprep.subr.bf16.mxu1 %v1272_v4  ;;  %v1334_v4 = vpack.c.bf16 %v1185_v63, %v1178_v62  ;;  %v1342_v5 = vpack.c.bf16 %v1200_v3, %v1193_v0  ;;  %v1096_v62 = vld [vmem:[%s3669_s11 + $0x1e0] sm:$0xff]  ;;  %v1103_v63 = vld [vmem:[%s3669_s11 + $0x218] sm:$0xff]  ;;  %v1118_v3 = vld [vmem:[%s3669_s11 + $0x290] sm:$0xff] }
 0x597   :  { %v1111_v0 = vld [vmem:[%s3669_s11 + $0x258] sm:$0xff] }
 0x599   :  { %1457 = vmatpush1.bf16.msra.mxu1 %v1271_v9  ;;  %v1214_v9 = vld [vmem:[%s3669_s11 + $0x590] sm:$0xff] }
 0x59a   :  { %1458 = vmatprep.subr.bf16.mxu1 %v1279_v10  ;;  %v1341_v10 = vpack.c.bf16 %v1199_v7, %v1192_v6  ;;  %v1349_v11 = vpack.c.bf16 %v1214_v9, %v1207_v8  ;;  %v1110_v6 = vld [vmem:[%s3669_s11 + $0x250] sm:$0xff]  ;;  %v1117_v7 = vld [vmem:[%s3669_s11 + $0x288] sm:$0xff]  ;;  %v1132_v9 = vld [vmem:[%s3669_s11 + $0x300] sm:$0xff] }
 0x59b   :  { %v1125_v8 = vld [vmem:[%s3669_s11 + $0x2c8] sm:$0xff] }
 0x59d   :  { %1459 = vmatpush1.bf16.msra.mxu1 %v1278_v15  ;;  %v1228_v15 = vld [vmem:[%s3669_s11 + $0x600] sm:$0xff] }
 0x59e   :  { %1460 = vmatprep.subr.bf16.mxu1 %v1286_v16  ;;  %v1348_v16 = vpack.c.bf16 %v1213_v13, %v1206_v12  ;;  %v1356_v17 = vpack.c.bf16 %v1228_v15, %v1221_v14  ;;  %v1124_v12 = vld [vmem:[%s3669_s11 + $0x2c0] sm:$0xff]  ;;  %v1131_v13 = vld [vmem:[%s3669_s11 + $0x2f8] sm:$0xff]  ;;  %v1146_v15 = vld [vmem:[%s3669_s11 + $0x370] sm:$0xff] }
 0x59f   :  { %v1139_v14 = vld [vmem:[%s3669_s11 + $0x338] sm:$0xff] }
 0x5a1   :  { %1461 = vmatpush1.bf16.msra.mxu1 %v1285_v21  ;;  %v1242_v21 = vld [vmem:[%s3669_s11 + $0x670] sm:$0xff] }
 0x5a2   :  { %1462 = vmatprep.subr.bf16.mxu1 %v1293_v22  ;;  %v1355_v22 = vpack.c.bf16 %v1227_v19, %v1220_v18  ;;  %v1363_v23 = vpack.c.bf16 %v1242_v21, %v1235_v20  ;;  %v1138_v18 = vld [vmem:[%s3669_s11 + $0x330] sm:$0xff]  ;;  %v1145_v19 = vld [vmem:[%s3669_s11 + $0x368] sm:$0xff]  ;;  %v1160_v21 = vld [vmem:[%s3669_s11 + $0x3e0] sm:$0xff] }
 0x5a3   :  { %v1153_v20 = vld [vmem:[%s3669_s11 + $0x3a8] sm:$0xff] }
 0x5a5   :  { %1463 = vmatpush1.bf16.msra.mxu1 %v1292_v27  ;;  %v1256_v27 = vld [vmem:[%s3669_s11 + $0x6e0] sm:$0xff] }
 0x5a6   :  { %1464 = vmatprep.subr.bf16.mxu1 %v1300_v28  ;;  %v1362_v28 = vpack.c.bf16 %v1241_v25, %v1234_v24  ;;  %v1370_v29 = vpack.c.bf16 %v1256_v27, %v1249_v26  ;;  %v1152_v24 = vld [vmem:[%s3669_s11 + $0x3a0] sm:$0xff]  ;;  %v1159_v25 = vld [vmem:[%s3669_s11 + $0x3d8] sm:$0xff]  ;;  %v1174_v27 = vld [vmem:[%s3669_s11 + $0x450] sm:$0xff] }
 0x5a7   :  { %v1167_v26 = vld [vmem:[%s3669_s11 + $0x418] sm:$0xff] }
 0x5a9   :  { %1465 = vmatpush1.bf16.msra.mxu1 %v1299_v33  ;;  %v1048_v33 = vld [vmem:[%s3669_s11 + $0x60] sm:$0xff] }
 0x5aa   :  { %1466 = vmatprep.subr.bf16.mxu1 %v1307_v34  ;;  %v1369_v34 = vpack.c.bf16 %v1255_v31, %v1248_v30  ;;  %v1267_v35 = vpack.c.bf16 %v1048_v33, %v1041_v32  ;;  %v1166_v30 = vld [vmem:[%s3669_s11 + $0x410] sm:$0xff]  ;;  %v1173_v31 = vld [vmem:[%s3669_s11 + $0x448] sm:$0xff]  ;;  %v1188_v33 = vld [vmem:[%s3669_s11 + $0x4c0] sm:$0xff] }
 0x5ab   :  { %v1181_v32 = vld [vmem:[%s3669_s11 + $0x488] sm:$0xff] }
 0x5ad   :  { %1467 = vmatpush1.bf16.msra.mxu1 %v1306_v39  ;;  %v1062_v39 = vld [vmem:[%s3669_s11 + $0xd0] sm:$0xff] }
 0x5ae   :  { %1468 = vmatprep.subr.bf16.mxu1 %v1314_v40  ;;  %v1266_v40 = vpack.c.bf16 %v1047_v37, %v1040_v36  ;;  %v1274_v41 = vpack.c.bf16 %v1062_v39, %v1055_v38  ;;  %v1180_v36 = vld [vmem:[%s3669_s11 + $0x480] sm:$0xff]  ;;  %v1187_v37 = vld [vmem:[%s3669_s11 + $0x4b8] sm:$0xff]  ;;  %v1202_v39 = vld [vmem:[%s3669_s11 + $0x530] sm:$0xff] }
 0x5af   :  { %v1195_v38 = vld [vmem:[%s3669_s11 + $0x4f8] sm:$0xff] }
 0x5b1   :  { %1469 = vmatpush1.bf16.msra.mxu1 %v1313_v47  ;;  %v1076_v47 = vld [vmem:[%s3669_s11 + $0x140] sm:$0xff] }
 0x5b2   :  { %1470 = vmatprep.subr.bf16.mxu1 %v1321_v49  ;;  %v1273_v49 = vpack.c.bf16 %v1061_v43, %v1054_v42  ;;  %v1281_v50 = vpack.c.bf16 %v1076_v47, %v1069_v44  ;;  %v1194_v42 = vld [vmem:[%s3669_s11 + $0x4f0] sm:$0xff]  ;;  %v1201_v43 = vld [vmem:[%s3669_s11 + $0x528] sm:$0xff]  ;;  %v1216_v47 = vld [vmem:[%s3669_s11 + $0x5a0] sm:$0xff] }
 0x5b3   :  { %v1209_v44 = vld [vmem:[%s3669_s11 + $0x568] sm:$0xff] }
 0x5b5   :  { %1471 = vmatpush1.bf16.msra.mxu1 %v1320_v54  ;;  %v1090_v54 = vld [vmem:[%s3669_s11 + $0x1b0] sm:$0xff] }
 0x5b6   :  { %1472 = vmatprep.subr.bf16.mxu1 %v1328_v55  ;;  %v1288_v55 = vpack.c.bf16 %v1090_v54, %v1083_v53  ;;  %v1223_v53 = vld [vmem:[%s3669_s11 + $0x5d8] sm:$0xff]  ;;  %v1230_v54 = vld [vmem:[%s3669_s11 + $0x610] sm:$0xff] }
 0x5b9   :  { %1473 = vmatpush1.bf16.msra.mxu1 %v1327_v60  ;;  %v1287_v60 = vpack.c.bf16 %v1089_v57, %v1082_v56  ;;  %v1222_v56 = vld [vmem:[%s3669_s11 + $0x5d0] sm:$0xff]  ;;  %v1229_v57 = vld [vmem:[%s3669_s11 + $0x608] sm:$0xff] }
 0x5ba   :  { %1474 = vmatprep.subr.bf16.mxu1 %v1335_v61  ;;  %v1295_v61 = vpack.c.bf16 %v1104_v59, %v1097_v58  ;;  %v1237_v58 = vld [vmem:[%s3669_s11 + $0x648] sm:$0xff]  ;;  %v1244_v59 = vld [vmem:[%s3669_s11 + $0x680] sm:$0xff] }
 0x5bd   :  { %1475 = vmatpush1.bf16.msra.mxu1 %v1334_v4  ;;  %v1294_v4 = vpack.c.bf16 %v1103_v63, %v1096_v62  ;;  %v1236_v62 = vld [vmem:[%s3669_s11 + $0x640] sm:$0xff]  ;;  %v1243_v63 = vld [vmem:[%s3669_s11 + $0x678] sm:$0xff] }
 0x5be   :  { %1476 = vmatprep.subr.bf16.mxu1 %v1342_v5  ;;  %v1302_v5 = vpack.c.bf16 %v1118_v3, %v1111_v0  ;;  %v1251_v0 = vld [vmem:[%s3669_s11 + $0x6b8] sm:$0xff]  ;;  %v1258_v3 = vld [vmem:[%s3669_s11 + $0x6f0] sm:$0xff] }
 0x5c1   :  { %1477 = vmatpush1.bf16.msra.mxu1 %v1341_v10  ;;  %v1301_v10 = vpack.c.bf16 %v1117_v7, %v1110_v6  ;;  %v1250_v6 = vld [vmem:[%s3669_s11 + $0x6b0] sm:$0xff]  ;;  %v1257_v7 = vld [vmem:[%s3669_s11 + $0x6e8] sm:$0xff] }
 0x5c2   :  { %1478 = vmatprep.subr.bf16.mxu1 %v1349_v11  ;;  %v1309_v11 = vpack.c.bf16 %v1132_v9, %v1125_v8  ;;  %v1371_v8 = vpack.c.bf16 %v1257_v7, %v1250_v6  ;;  %v3616_v9 = vld [vmem:[%s3670_s12] sm:$0x7f] }
 0x5c5   :  { %1479 = vmatpush1.bf16.msra.mxu1 %v1348_v16  ;;  %v1308_v16 = vpack.c.bf16 %v1131_v13, %v1124_v12  ;;  %v1383_v12 = vrot.slane %v3616_v9, %v2883_v48 }
 0x5c6   :  { %1480 = vmatprep.subr.bf16.mxu1 %v1356_v17  ;;  %v1316_v17 = vpack.c.bf16 %v1146_v15, %v1139_v14 }
 0x5c9   :  { %1481 = vmatpush1.bf16.msra.mxu1 %v1355_v22  ;;  %v1315_v22 = vpack.c.bf16 %v1145_v19, %v1138_v18 }
 0x5ca   :  { %1482 = vmatprep.subr.bf16.mxu1 %v1363_v23  ;;  %v1323_v23 = vpack.c.bf16 %v1160_v21, %v1153_v20 }
 0x5cd   :  { %1483 = vmatpush1.bf16.msra.mxu1 %v1362_v28  ;;  %v1322_v28 = vpack.c.bf16 %v1159_v25, %v1152_v24 }
 0x5ce   :  { %1484 = vmatprep.subr.bf16.mxu1 %v1370_v29  ;;  %v1330_v29 = vpack.c.bf16 %v1174_v27, %v1167_v26 }
 0x5d1   :  { %1485 = vmatpush1.bf16.msra.mxu1 %v1369_v34  ;;  %v1329_v34 = vpack.c.bf16 %v1173_v31, %v1166_v30 }
 0x5d2   :  { %1497 = vmatprep.subr.bf16.mxu1 %v1267_v35  ;;  %v1337_v35 = vpack.c.bf16 %v1188_v33, %v1181_v32 }
 0x5d4   :  { %1487 = vmatmul.mubr.bf16.vlgmr.msra.gmra.mrb[16].mxu1 %v3235_v1 }
 0x5d5   :  { %1498 = vmatpush1.bf16.msra.mxu1 %v1266_v40  ;;  %1529 = vmatprep.mubr.bf16.mxu1 %v3237_v2  ;;  %v1280_v2 = vpack.c.bf16 %v1075_v52, %v1068_v51  ;;  %v1336_v40 = vpack.c.bf16 %v1187_v37, %v1180_v36  ;;  %v1208_v51 = vld [vmem:[%s3669_s11 + $0x560] sm:$0xff]  ;;  %v1215_v52 = vld [vmem:[%s3669_s11 + $0x598] sm:$0xff]  ;;  %s2066_s11 = smov [#allocation2]  }
 0x5d6   :  { %1499 = vmatprep.subr.bf16.mxu1 %v1274_v41  ;;  %v1344_v41 = vpack.c.bf16 %v1202_v39, %v1195_v38  ;;  %s1684_s12 = sshll.u32 %s2066_s11, 4  ;;  %s1685_s12 = int_to_ptr.vmem [resolvable:$true] %s1684_s12 }
 0x5d7   :  { %s2015_s26 = scalar_lea.vmem %s1685_s12, 256  ;;  %p2020_p1 = scmp.lt.s32.totalorder %s1685_s12, %s1685_s12 }
 0x5d8   :  { %p2016_p0 = scmp.ne.s32.totalorder %s1685_s12, %s2015_s26  ;;  %p2021_p2 = scmp.lt.s32.totalorder %s2015_s26, %s2015_s26 }
 0x5d9   :  { %1500 = vmatpush1.bf16.msra.mxu1 %v1273_v49  ;;  %v1343_v49 = vpack.c.bf16 %v1201_v43, %v1194_v42 }
 0x5da   :  { %1501 = vmatprep.subr.bf16.mxu1 %v1281_v50  ;;  %v1351_v50 = vpack.c.bf16 %v1216_v47, %v1209_v44  ;;  %p2022_p3 = por %p2021_p2, %p2020_p1 }
 0x5dc   :  { %p2023_p4 = pnand %p2022_p3, %p2016_p0 }
 0x5dd   :  { %1502 = vmatpush1.bf16.msra.mxu1 %v1280_v2  ;;  %v1350_v2 = vpack.c.bf16 %v1215_v52, %v1208_v51 }
 0x5de   :  { %1503 = vmatprep.subr.bf16.mxu1 %v1288_v55  ;;  %v1358_v55 = vpack.c.bf16 %v1230_v54, %v1223_v53 }
 0x5e1   :  { %1504 = vmatpush1.bf16.msra.mxu1 %v1287_v60  ;;  %v1357_v60 = vpack.c.bf16 %v1229_v57, %v1222_v56 }
 0x5e2   :  { %1505 = vmatprep.subr.bf16.mxu1 %v1295_v61  ;;  %v1365_v61 = vpack.c.bf16 %v1244_v59, %v1237_v58 }
 0x5e5   :  { %1506 = vmatpush1.bf16.msra.mxu1 %v1294_v4  ;;  %v1364_v4 = vpack.c.bf16 %v1243_v63, %v1236_v62 }
 0x5e6   :  { %1507 = vmatprep.subr.bf16.mxu1 %v1302_v5  ;;  %v1372_v5 = vpack.c.bf16 %v1258_v3, %v1251_v0 }
 0x5e9   :  { %1508 = vmatpush1.bf16.msra.mxu1 %v1301_v10  ;;  %v1402_v10 = vsub.s32 6, %v2874_v45 }
 0x5ea   :  { %1509 = vmatprep.subr.bf16.mxu1 %v1309_v11  ;;  %v1379_v11 = vrot.slane %v3616_v9, %v2877_v46 }
 0x5eb   :  { %v1403_v15 = vrot.slane %v3616_v9, %v1402_v10 }
 0x5ed   :  { %1510 = vmatpush1.bf16.msra.mxu1 %v1308_v16 }
 0x5ee   :  { %1511 = vmatprep.subr.bf16.mxu1 %v1316_v17 }
 0x5f1   :  { %1512 = vmatpush1.bf16.msra.mxu1 %v1315_v22 }
 0x5f2   :  { %1513 = vmatprep.subr.bf16.mxu1 %v1323_v23 }
 0x5f5   :  { %1514 = vmatpush1.bf16.msra.mxu1 %v1322_v28 }
 0x5f6   :  { %1515 = vmatprep.subr.bf16.mxu1 %v1330_v29 }
 0x5f9   :  { %1516 = vmatpush1.bf16.msra.mxu1 %v1329_v34 }
 0x5fa   :  { %1517 = vmatprep.subr.bf16.mxu1 %v1337_v35 }
 0x5fd   :  { %1518 = vmatpush1.bf16.msra.mxu1 %v1336_v40 }
 0x5fe   :  { %1519 = vmatprep.subr.bf16.mxu1 %v1344_v41 }
 0x601   :  { %1520 = vmatpush1.bf16.msra.mxu1 %v1343_v49 }
 0x602   :  { %1521 = vmatprep.subr.bf16.mxu1 %v1351_v50 }
 0x605   :  { %1522 = vmatpush1.bf16.msra.mxu1 %v1350_v2 }
 0x606   :  { %1523 = vmatprep.subr.bf16.mxu1 %v1358_v55 }
 0x609   :  { %1524 = vmatpush1.bf16.msra.mxu1 %v1357_v60 }
 0x60a   :  { %1525 = vmatprep.subr.bf16.mxu1 %v1365_v61 }
 0x60d   :  { %1526 = vmatpush1.bf16.msra.mxu1 %v1364_v4 }
 0x60e   :  { %1527 = vmatprep.subr.bf16.mxu1 %v1372_v5 }
 0x611   :  { %1528 = vmatpush1.bf16.msra.mxu1 %v1371_v8 }
 0x614   :  { %1530 = vmatmul.mubr.bf16.vlgmr.msra.gmra.mrb[20].mxu1 %v3235_v1 }
 0x667   :  { %v1445_v13 = vpop.f32.mrb[12].mxu1  ;;  %v1812_v14 = vpop.f32.mrb[4].mxu0 }
 0x668   :  { %v1446_v16 = vadd.f32 %v1445_v13, %v1379_v11  ;;  %v1447_v17 = vpop.f32.mrb[13].mxu1  ;;  %v1813_v1 = vpop.f32.mrb[5].mxu0 }
 0x669   :  { %v1448_v18 = vadd.f32 %v1447_v17, %v1383_v12  ;;  %v1814_v19 = vadd.f32 %v1813_v1, %v1812_v14  ;;  %v1449_v20 = vpop.f32.mrb[14].mxu1  ;;  %v1815_v21 = vpop.f32.mrb[6].mxu0 }
 0x66a   :  { %v1736_v22 = vmul.f32 -1.442695, %v1446_v16  ;;  %v1450_v23 = vadd.f32 %v1449_v20, %v1379_v11  ;;  %v1451_v24 = vpop.f32.mrb[15].mxu1  ;;  %v1816_v25 = vpop.f32.mrb[7].mxu0 }
 0x66b   :  { %v1737_v26 = vmul.f32 -1.442695, %v1448_v18  ;;  %v1575_v46 = vadd.f32 %v1814_v19, %v1403_v15  ;;  %v1452_v27 = vadd.f32 %v1451_v24, %v1383_v12  ;;  %v1817_v28 = vadd.f32 %v1816_v25, %v1815_v21 }
 0x66c   :  { %1959 = vpow2.f32 %v1736_v22  ;;  %v1743_v48 = vmul.f32 -1.442695, %v1450_v23 }
 0x66d   :  { %1961 = vpow2.f32 %v1737_v26  ;;  %v1742_v29 = vmul.f32 -1.442695, %v1575_v46  ;;  %v1744_v30 = vmul.f32 -1.442695, %v1452_v27  ;;  %v1578_v31 = vadd.f32 %v1817_v28, %v1403_v15 }
 0x66e   :  { %1963 = vpow2.f32 %v1743_v48 }
 0x66f   :  { %1965 = vpow2.f32 %v1742_v29  ;;  %v1749_v32 = vmul.f32 -1.442695, %v1578_v31 }
 0x670   :  { %1967 = vpow2.f32 %v1744_v30 }
 0x671   :  { %1969 = vpow2.f32 %v1749_v32 }
 0x676   :  { %v1960_v33 = vpop.eup %1959 }
 0x677   :  { %v1962_v34 = vpop.eup %1961  ;;  %v1623_v35 = vadd.f32 1.0, %v1960_v33 }
 0x678   :  { %v1964_v36 = vpop.eup %1963  ;;  %v1624_v37 = vadd.f32 1.0, %v1962_v34 }
 0x679   :  { %v1966_v38 = vpop.eup %1965  ;;  %1971 = vrcp.f32 %v1623_v35  ;;  %v1630_v39 = vadd.f32 1.0, %v1964_v36 }
 0x67a   :  { %v1968_v40 = vpop.eup %1967  ;;  %1973 = vrcp.f32 %v1624_v37  ;;  %v1629_v41 = vadd.f32 1.0, %v1966_v38 }
 0x67b   :  { %v1970_v42 = vpop.eup %1969  ;;  %1975 = vrcp.f32 %v1630_v39  ;;  %v1631_v43 = vadd.f32 1.0, %v1968_v40 }
 0x67c   :  { %1977 = vrcp.f32 %v1629_v41  ;;  %v1636_v44 = vadd.f32 1.0, %v1970_v42 }
 0x67d   :  { %1979 = vrcp.f32 %v1631_v43 }
 0x67e   :  { %1981 = vrcp.f32 %v1636_v44 }
 0x683   :  { %v1972_v47 = vpop.eup %1971 }
 0x684   :  { %v1974_v49 = vpop.eup %1973  ;;  %1665 = vst [vmem:[#allocation4] sm:$0xff] %v1972_v47 }
 0x685   :  { %v1976_v50 = vpop.eup %1975  ;;  %1666 = vst [vmem:[#allocation4 + $0x8] sm:$0xff] %v1974_v49 }
 0x686   :  { %v1978_v51 = vpop.eup %1977  ;;  %1672 = vst [vmem:[#allocation4 + $0x38] sm:$0xff] %v1976_v50 }
 0x687   :  { %v1980_v52 = vpop.eup %1979  ;;  %1671 = vst.msk [vmem:[#allocation4 + $0x30] sm:$0xff] %vm376_vm0, %v1978_v51 }
 0x688   :  { %v1982_v53 = vpop.eup %1981  ;;  %1673 = vst [vmem:[#allocation4 + $0x40] sm:$0xff] %v1980_v52 }
 0x689   :  { %1678 = vst.msk [vmem:[#allocation4 + $0x68] sm:$0xff] %vm376_vm0, %v1982_v53 }
 0x68a   :  { %2026 = shalt.err (!%p2023_p4)
}
 0x68b   :  { %s2027_s3 = scalar_lea.hbm %s3671_s13, 256 }
 0x68c   :  { %p2028_p5 = scmp.ne.s32.totalorder %s3671_s13, %s2027_s3  ;;  %p2031_p6 = scmp.lt.u32.totalorder %s2027_s3, %s3671_s13 }
 0x68e   :  { %p2033_p7 = pnand %p2031_p6, %p2028_p5 }
 0x690   :  { %2036 = shalt.err (!%p2033_p7)
}
 0x691   :  { %s2067_s29 = smov 128   ;;  %s2068_s30 = smov 8   ;;  %v1386_v54 = vsub.s32 2, %v2874_v45  ;;  %v1390_v2 = vsub.s32 3, %v2874_v45  ;;  %v1394_v19 = vsub.s32 4, %v2874_v45  ;;  %v1398_v20 = vsub.s32 5, %v2874_v45 }
 0x692   :  { %1690 = dma.vmem_to_hbm [thread:$0]  %s1685_s12, 256, %s3671_s13, [#allocation3], %s2067_s29, %s2067_s29, %s2068_s30  }
 0x693   :  { %v1387_v55 = vrot.slane %v3616_v9, %v1386_v54  ;;  %v1391_v56 = vrot.slane %v3616_v9, %v1390_v2  ;;  %v1395_v21 = vrot.slane %v3616_v9, %v1394_v19  ;;  %v1399_v22 = vrot.slane %v3616_v9, %v1398_v20  ;;  %s2069_s13 = smov [#allocation4]  }
 0x694   :  { %s1696_s15 = sshll.u32 %s2069_s13, 4  ;;  %s1697_s15 = int_to_ptr.vmem [resolvable:$true] %s1696_s15 }
 0x695   :  { %s2037_s16 = scalar_lea.vmem %s1697_s15, 1792  ;;  %p2042_p9 = scmp.lt.s32.totalorder %s1697_s15, %s1697_s15 }
 0x696   :  { %p2038_p8 = scmp.ne.s32.totalorder %s1697_s15, %s2037_s16  ;;  %p2043_p10 = scmp.lt.s32.totalorder %s2037_s16, %s2037_s16 }
 0x698   :  { %p2044_p11 = por %p2043_p10, %p2042_p9 }
 0x69a   :  { %p2045_p12 = pnand %p2044_p11, %p2038_p8 }
 0x6a7   :  { %v1488_v57 = vpop.f32.mrb[16].mxu1 }
 0x6a8   :  { %v1489_v58 = vadd.f32 %v1488_v57, %v1387_v55  ;;  %v1490_v59 = vpop.f32.mrb[17].mxu1 }
 0x6a9   :  { %v1491_v60 = vadd.f32 %v1490_v59, %v1391_v56  ;;  %v1492_v61 = vpop.f32.mrb[18].mxu1 }
 0x6aa   :  { %v1738_v62 = vmul.f32 -1.442695, %v1489_v58  ;;  %v1493_v63 = vadd.f32 %v1492_v61, %v1387_v55  ;;  %v1494_v0 = vpop.f32.mrb[19].mxu1 }
 0x6ab   :  { %v1739_v3 = vmul.f32 -1.442695, %v1491_v60  ;;  %v1495_v4 = vadd.f32 %v1494_v0, %v1391_v56 }
 0x6ac   :  { %1983 = vpow2.f32 %v1738_v62  ;;  %v1745_v5 = vmul.f32 -1.442695, %v1493_v63 }
 0x6ad   :  { %1985 = vpow2.f32 %v1739_v3  ;;  %v1746_v6 = vmul.f32 -1.442695, %v1495_v4 }
 0x6ae   :  { %1987 = vpow2.f32 %v1745_v5 }
 0x6af   :  { %1989 = vpow2.f32 %v1746_v6 }
 0x6b6   :  { %v1984_v7 = vpop.eup %1983 }
 0x6b7   :  { %v1986_v8 = vpop.eup %1985  ;;  %v1625_v10 = vadd.f32 1.0, %v1984_v7 }
 0x6b8   :  { %v1988_v11 = vpop.eup %1987  ;;  %v1626_v12 = vadd.f32 1.0, %v1986_v8 }
 0x6b9   :  { %v1990_v13 = vpop.eup %1989  ;;  %1991 = vrcp.f32 %v1625_v10  ;;  %v1632_v14 = vadd.f32 1.0, %v1988_v11 }
 0x6ba   :  { %1993 = vrcp.f32 %v1626_v12  ;;  %v1633_v15 = vadd.f32 1.0, %v1990_v13 }
 0x6bb   :  { %1995 = vrcp.f32 %v1632_v14 }
 0x6bc   :  { %1997 = vrcp.f32 %v1633_v15 }
 0x6c3   :  { %v1992_v16 = vpop.eup %1991 }
 0x6c4   :  { %v1994_v17 = vpop.eup %1993  ;;  %1667 = vst [vmem:[#allocation4 + $0x10] sm:$0xff] %v1992_v16 }
 0x6c5   :  { %v1996_v1 = vpop.eup %1995  ;;  %1668 = vst [vmem:[#allocation4 + $0x18] sm:$0xff] %v1994_v17 }
 0x6c6   :  { %v1998_v18 = vpop.eup %1997  ;;  %1674 = vst [vmem:[#allocation4 + $0x48] sm:$0xff] %v1996_v1 }
 0x6c7   :  { %1675 = vst [vmem:[#allocation4 + $0x50] sm:$0xff] %v1998_v18 }
 0x6e7   :  { %v1531_v23 = vpop.f32.mrb[20].mxu1 }
 0x6e8   :  { %v1532_v24 = vadd.f32 %v1531_v23, %v1395_v21  ;;  %v1533_v25 = vpop.f32.mrb[21].mxu1 }
 0x6e9   :  { %v1534_v26 = vadd.f32 %v1533_v25, %v1399_v22  ;;  %v1535_v46 = vpop.f32.mrb[22].mxu1 }
 0x6ea   :  { %v1740_v27 = vmul.f32 -1.442695, %v1532_v24  ;;  %v1536_v28 = vadd.f32 %v1535_v46, %v1395_v21  ;;  %v1537_v48 = vpop.f32.mrb[23].mxu1 }
 0x6eb   :  { %v1741_v29 = vmul.f32 -1.442695, %v1534_v26  ;;  %v1538_v30 = vadd.f32 %v1537_v48, %v1399_v22 }
 0x6ec   :  { %1999 = vpow2.f32 %v1740_v27  ;;  %v1747_v31 = vmul.f32 -1.442695, %v1536_v28 }
 0x6ed   :  { %2001 = vpow2.f32 %v1741_v29  ;;  %v1748_v32 = vmul.f32 -1.442695, %v1538_v30 }
 0x6ee   :  { %2003 = vpow2.f32 %v1747_v31 }
 0x6ef   :  { %2005 = vpow2.f32 %v1748_v32 }
 0x6f6   :  { %v2000_v45 = vpop.eup %1999 }
 0x6f7   :  { %v2002_v33 = vpop.eup %2001  ;;  %v1627_v34 = vadd.f32 1.0, %v2000_v45 }
 0x6f8   :  { %v2004_v9 = vpop.eup %2003  ;;  %v1628_v35 = vadd.f32 1.0, %v2002_v33 }
 0x6f9   :  { %v2006_v36 = vpop.eup %2005  ;;  %2007 = vrcp.f32 %v1627_v34  ;;  %v1634_v37 = vadd.f32 1.0, %v2004_v9 }
 0x6fa   :  { %2009 = vrcp.f32 %v1628_v35  ;;  %v1635_v38 = vadd.f32 1.0, %v2006_v36 }
 0x6fb   :  { %2011 = vrcp.f32 %v1634_v37 }
 0x6fc   :  { %2013 = vrcp.f32 %v1635_v38 }
 0x703   :  { %v2008_v39 = vpop.eup %2007 }
 0x704   :  { %v2010_v40 = vpop.eup %2009  ;;  %1669 = vst [vmem:[#allocation4 + $0x20] sm:$0xff] %v2008_v39 }
 0x705   :  { %v2012_v41 = vpop.eup %2011  ;;  %1670 = vst [vmem:[#allocation4 + $0x28] sm:$0xff] %v2010_v40 }
 0x706   :  { %v2014_v42 = vpop.eup %2013  ;;  %1676 = vst [vmem:[#allocation4 + $0x58] sm:$0xff] %v2012_v41 }
 0x707   :  { %1677 = vst [vmem:[#allocation4 + $0x60] sm:$0xff] %v2014_v42 }
 0x708   :  { %2048 = shalt.err (!%p2045_p12)
}
 0x709   :  { %s2049_s10 = scalar_lea.hbm %s3672_s14, 1792 }
 0x70a   :  { %p2050_p13 = scmp.ne.s32.totalorder %s3672_s14, %s2049_s10  ;;  %p2053_p0 = scmp.lt.u32.totalorder %s2049_s10, %s3672_s14 }
 0x70c   :  { %p2055_p1 = pnand %p2053_p0, %p2050_p13 }
 0x70e   :  { %2058 = shalt.err (!%p2055_p1)
}
 0x70f   :  { %s2070_s1 = smov 896   ;;  %s2071_s21 = smov 56  }
 0x710   :  { %1702 = dma.vmem_to_hbm [thread:$0]  %s1697_s15, 1792, %s3672_s14, [#allocation5], %s2070_s1, %s2070_s1, %s2071_s21  }
 0x711   :  { %2059 = dma.done.wait [#allocation3], 256  }
 0x712   :  { %2060 = vsyncadd [#allocation3], 4294967040 }
 0x713   :  { %2061 = dma.done.wait [#allocation5], 1792  }
 0x714   :  { %2062 = vsyncadd [#allocation5], 4294965504 }
 0x715   :  { %1709 = vsyncpa [#allocation3], 1 }
 0x716   :  { %1710 = vsyncpa [#allocation5], 1 }

</bundles_post_ra>
